<compile_context>
chip_gen: v5e
topology: v5e:2x2
jax: 0.10.0
libtpu: 0.0.40
codegen_flags: <defaults>
</compile_context>

<pallas_src>
import jax
import jax.numpy as jnp
from jax import lax
from jax.experimental import pallas as pl
from jax.experimental.pallas import tpu as pltpu


# ----------------------------- Pallas kernels ------------------------------ #

def esa_head_kernel(x_ref, w1_ref, b1_ref, c1_ref):
    # x_ref: (1, C, T)   w1_ref: (f, C)   b1_ref: (f, 1)   c1_ref: (1, f, T)
    x = x_ref[0]                                                   # (C, T)
    c1 = jnp.dot(w1_ref[...], x, preferred_element_type=jnp.float32) + b1_ref[...]
    c1_ref[0] = c1.astype(c1_ref.dtype)


def esa_tail_kernel(x_ref, c3s_ref, up_ref, wcf_ref, bcf_ref, w4_ref, b4_ref, o_ref):
    # x_ref:   (1, C, T)      full-res input tile (native dtype, never copied to f32)
    # c3s_ref: (1, f, Sp)     small-branch output, spatially flattened (zero-padded)
    # up_ref:  (Sp, T)        bilinear (align_corners=False) interpolation matrix tile
    # wcf_ref: (f, C), bcf_ref: (f, 1)   conv_f ∘ conv1 folded affine
    # w4_ref:  (C, f), b4_ref: (C, 1)    conv4
    # o_ref:   (1, C, T)
    x = x_ref[0]                                                   # (C, T)
    cf = jnp.dot(wcf_ref[...], x, preferred_element_type=jnp.float32) + bcf_ref[...]
    c3 = jnp.dot(c3s_ref[0], up_ref[...], preferred_element_type=jnp.float32)
    c4 = jnp.dot(w4_ref[...], (c3 + cf).astype(w4_ref.dtype),
                 preferred_element_type=jnp.float32) + b4_ref[...]
    m = jax.nn.sigmoid(c4)                                         # (C, T), f32
    o_ref[0] = (x * m.astype(x.dtype)).astype(o_ref.dtype)         # gate in native dtype


# ------------------------------ JAX helpers -------------------------------- #

def _conv2d(x, w, b, stride=1, padding=0):
    out = lax.conv_general_dilated(
        x, w,
        window_strides=(stride, stride),
        padding=((padding, padding), (padding, padding)),
        dimension_numbers=("NCHW", "OIHW", "NCHW"),
        precision=lax.Precision.HIGHEST,
    )
    return out + b[None, :, None, None]


def _maxpool2d(x, k, s):
    return lax.reduce_window(
        x, -jnp.inf, lax.max,
        window_dimensions=(1, 1, k, k),
        window_strides=(1, 1, s, s),
        padding="VALID",
    )


def _esa_small_branch(c1_, p):
    """conv2(stride 2) -> maxpool(7,3) -> conv_max+relu -> conv3+relu -> conv3_."""
    # TODO(synk): this tiny downsampled branch (strided/pooled 3x3 convs) runs as
    # plain-JAX/XLA ops; it moves a small fraction of the HBM bytes and has no
    # clean/beneficial Pallas mapping here.
    c1 = _conv2d(c1_, p["w2"], p["b2"], stride=2, padding=0)
    v_max = _maxpool2d(c1, 7, 3)
    v_range = jax.nn.relu(_conv2d(v_max, p["w_max"], p["b_max"], padding=1))
    c3 = jax.nn.relu(_conv2d(v_range, p["w3"], p["b3"], padding=1))
    c3 = _conv2d(c3, p["w3_"], p["b3_"], padding=1)
    return c3


def _bilinear_matrix(in_size, out_size, dtype=jnp.float32):
    """(out_size, in_size) 1-D interpolation matrix matching PyTorch
    F.interpolate(mode='bilinear', align_corners=False) along one axis."""
    scale = in_size / out_size
    dst = jnp.arange(out_size, dtype=jnp.float32)
    src = jnp.maximum((dst + 0.5) * scale - 0.5, 0.0)
    i0 = jnp.clip(jnp.floor(src).astype(jnp.int32), 0, in_size - 1)
    i1 = jnp.clip(i0 + 1, 0, in_size - 1)
    w1 = src - i0.astype(jnp.float32)
    w0 = 1.0 - w1
    rows = jnp.arange(out_size)
    m = jnp.zeros((out_size, in_size), jnp.float32)
    m = m.at[rows, i0].add(w0).at[rows, i1].add(w1)
    return m.astype(dtype)


def _choose_hw_tile(hw, c, itemsize, budget_bytes=16 * 1024 * 1024):
    """Largest 128-multiple divisor of hw whose (double-buffered) in/out blocks
    plus f32 temporaries fit `budget_bytes`; full extent for small inputs."""
    if hw <= 2048 or hw % 128 != 0:
        return hw
    per_col = 4 * c * itemsize + 16 * c   # 2x in + 2x out buffers + f32 temps per lane column
    t = max(128, min(hw, (budget_bytes // per_col) // 128 * 128))
    while hw % t:
        t -= 128
    return t


_COMPILER_PARAMS = pltpu.CompilerParams(
    dimension_semantics=("parallel", "parallel"),
    vmem_limit_bytes=48 * 1024 * 1024,    # explicit, safe on v5e/v6e (128 MiB) and v7x (64 MiB)
)


# ------------------------------ ESA forward -------------------------------- #

def esa_forward(x, p):
    """ESA forward pass. x: (N, C, H, W); p: dict of PyTorch-layout conv weights."""
    N, C, H, W = x.shape
    f = p["w1"].shape[0]
    HW = H * W
    dt = x.dtype

    x_flat = x.reshape(N, C, HW)                    # channels-on-sublanes, HW-on-lanes
    T = _choose_hw_tile(HW, C, x.dtype.itemsize)
    grid = (N, HW // T)

    # Weights pre-cast once in the wrapper (no per-step in-kernel casts).
    w1 = p["w1"].reshape(f, C).astype(jnp.float32)
    b1 = p["b1"].reshape(f, 1).astype(jnp.float32)

    # ---- Pallas kernel 1: c1_ = conv1(x) (1x1) at full resolution ----
    c1_flat = pl.pallas_call(
        esa_head_kernel,
        out_shape=jax.ShapeDtypeStruct((N, f, HW), dt),
        grid_spec=pltpu.PrefetchScalarGridSpec(
            num_scalar_prefetch=0,
            grid=grid,
            in_specs=[
                pl.BlockSpec((1, C, T), lambda n, j: (n, 0, j)),
                pl.BlockSpec((f, C), lambda n, j: (0, 0)),
                pl.BlockSpec((f, 1), lambda n, j: (0, 0)),
            ],
            out_specs=pl.BlockSpec((1, f, T), lambda n, j: (n, 0, j)),
        ),
        compiler_params=_COMPILER_PARAMS,
    )(x_flat, w1, b1)

    # ---- tiny downsampled branch (plain JAX) ----
    c3_small = _esa_small_branch(c1_flat.reshape(N, f, H, W).astype(jnp.float32), p)
    hp, wp = c3_small.shape[2], c3_small.shape[3]
    sp = hp * wp
    sp_pad = -(-sp // 8) * 8                        # pad K of the upsample matmul to x8

    c3s = c3_small.reshape(N, f, sp)
    c3s = jnp.pad(c3s, ((0, 0), (0, 0), (0, sp_pad - sp)))

    # Exact bilinear (align_corners=False) upsample as one (Sp, HW) matrix.
    ah = _bilinear_matrix(hp, H)                    # (H, hp)
    aw = _bilinear_matrix(wp, W)                    # (W, wp)
    up = jnp.einsum("Hh,Ww->hwHW", ah, aw).reshape(sp, HW)
    up = jnp.pad(up, ((0, sp_pad - sp), (0, 0))).astype(jnp.float32)

    # Fold conv_f ∘ conv1 into a single affine on x (both 1x1, no ReLU between).
    wf = p["wf"].reshape(f, f).astype(jnp.float32)
    bf = p["bf"].reshape(f).astype(jnp.float32)
    wcf = jnp.dot(wf, w1, precision=lax.Precision.HIGHEST)                    # (f, C)
    bcf = (jnp.dot(wf, b1.reshape(f), precision=lax.Precision.HIGHEST) + bf).reshape(f, 1)

    w4 = p["w4"].reshape(C, f).astype(jnp.float32)
    b4 = p["b4"].reshape(C, 1).astype(jnp.float32)

    # ---- Pallas kernel 2: upsample + conv_f + conv4 + sigmoid + gating, fused ----
    out_flat = pl.pallas_call(
        esa_tail_kernel,
        out_shape=jax.ShapeDtypeStruct((N, C, HW), dt),
        grid_spec=pltpu.PrefetchScalarGridSpec(
            num_scalar_prefetch=0,
            grid=grid,
            in_specs=[
                pl.BlockSpec((1, C, T), lambda n, j: (n, 0, j)),        # x
                pl.BlockSpec((1, f, sp_pad), lambda n, j: (n, 0, 0)),   # c3 (small)
                pl.BlockSpec((sp_pad, T), lambda n, j: (0, j)),         # upsample matrix
                pl.BlockSpec((f, C), lambda n, j: (0, 0)),              # conv_f∘conv1 W
                pl.BlockSpec((f, 1), lambda n, j: (0, 0)),              # conv_f∘conv1 b
                pl.BlockSpec((C, f), lambda n, j: (0, 0)),              # conv4 W
                pl.BlockSpec((C, 1), lambda n, j: (0, 0)),              # conv4 b
            ],
            out_specs=pl.BlockSpec((1, C, T), lambda n, j: (n, 0, j)),
        ),
        compiler_params=_COMPILER_PARAMS,
    )(x_flat, c3s, up, wcf, bcf, w4, b4)

    return out_flat.reshape(N, C, H, W)


# ------------------------------ JAX reference ------------------------------ #

def esa_reference(x, p):
    """Plain-JAX reference matching the PyTorch ESA forward."""
    N, C, H, W = x.shape

    def conv1x1(t, w, b):
        w2d = w.reshape(w.shape[0], w.shape[1])
        return (jnp.einsum("oi,nihw->nohw", w2d, t, precision=lax.Precision.HIGHEST)
                + b[None, :, None, None])

    c1_ = conv1x1(x, p["w1"], p["b1"])
    c3 = _esa_small_branch(c1_, p)
    hp, wp = c3.shape[2], c3.shape[3]
    ah = _bilinear_matrix(hp, H)
    aw = _bilinear_matrix(wp, W)
    c3 = jnp.einsum("Hh,nchw,Ww->ncHW", ah, c3, aw, precision=lax.Precision.HIGHEST)
    cf = conv1x1(c1_, p["wf"], p["bf"])
    c4 = conv1x1(c3 + cf, p["w4"], p["b4"])
    return x * jax.nn.sigmoid(c4)


# ----------------------------------- main ----------------------------------- #

if __name__ == "__main__":
    # Small shapes consistent with the module: n_feats divisible by 4, H,W large
    # enough that conv2(stride 2) -> max_pool2d(7, 3) yields a valid (3x3) map.
    N, n_feats, H, W = 2, 32, 32, 32
    f = n_feats // 4

    key = jax.random.PRNGKey(0)
    keys = jax.random.split(key, 16)
    x = jax.random.normal(keys[0], (N, n_feats, H, W), dtype=jnp.float32)

    def mk(k, shape, scale=0.1):
        return scale * jax.random.normal(k, shape, dtype=jnp.float32)

    # PyTorch Conv2d-layout weights (out, in, kh, kw) + biases (bias=True default).
    params = {
        "w1":    mk(keys[1], (f, n_feats, 1, 1)),
        "b1":    mk(keys[2], (f,), 0.05),
        "wf":    mk(keys[3], (f, f, 1, 1)),
        "bf":    mk(keys[4], (f,), 0.05),
        "w_max": mk(keys[5], (f, f, 3, 3)),
        "b_max": mk(keys[6], (f,), 0.05),
        "w2":    mk(keys[7], (f, f, 3, 3)),
        "b2":    mk(keys[8], (f,), 0.05),
        "w3":    mk(keys[9], (f, f, 3, 3)),
        "b3":    mk(keys[10], (f,), 0.05),
        "w3_":   mk(keys[11], (f, f, 3, 3)),
        "b3_":   mk(keys[12], (f,), 0.05),
        "w4":    mk(keys[13], (n_feats, f, 1, 1)),
        "b4":    mk(keys[14], (n_feats,), 0.05),
    }

    y = jax.jit(esa_forward)(x, params)
    y = jax.block_until_ready(y)

    y_ref = esa_reference(x, params)
    assert y.shape == (N, n_feats, H, W)
    max_err = float(jnp.max(jnp.abs(y - y_ref)))
    assert jnp.allclose(y, y_ref, atol=1e-4, rtol=1e-4), f"mismatch vs reference: {max_err}"

    print("KERNEL_OK")
</pallas_src>

<mosaic_0001>
module attributes {stable_mosaic.version = 11 : i64} {
  func.func @esa_head_kernel(%arg0: i32, %arg1: i32, %arg2: memref<1x32x1024xf32, #tpu.memory_space<vmem>>, %arg3: memref<8x32xf32, #tpu.memory_space<vmem>>, %arg4: memref<8x1xf32, #tpu.memory_space<vmem>>, %arg5: memref<1x8x1024xf32, #tpu.memory_space<vmem>>) attributes {dimension_semantics = [#tpu.dimension_semantics<parallel>, #tpu.dimension_semantics<parallel>], iteration_bounds = array<i64: 2, 1>, scalar_prefetch = 0 : i64, scratch_operands = 0 : i64, tpu.core_type = #tpu.core_type<tc>, window_params = [{transform_indices = @transform_0, window_bounds = array<i64: 1, 32, 1024>}, {pipeline_mode = #tpu.pipeline_mode<synchronous>, transform_indices = @transform_1, window_bounds = array<i64: 8, 32>}, {pipeline_mode = #tpu.pipeline_mode<synchronous>, transform_indices = @transform_2, window_bounds = array<i64: 8, 1>}, {transform_indices = @transform_3, window_bounds = array<i64: 1, 8, 1024>}]} {
    %c0 = arith.constant 0 : index
    %c0_0 = arith.constant 0 : index
    %c0_1 = arith.constant 0 : index
    %0 = vector.load %arg2[%c0, %c0_0, %c0_1] : memref<1x32x1024xf32, #tpu.memory_space<vmem>>, vector<1x32x1024xf32>
    %1 = vector.shape_cast %0 : vector<1x32x1024xf32> to vector<32x1024xf32>
    %c0_2 = arith.constant 0 : index
    %c0_3 = arith.constant 0 : index
    %2 = vector.load %arg3[%c0_2, %c0_3] : memref<8x32xf32, #tpu.memory_space<vmem>>, vector<8x32xf32>
    %cst = arith.constant dense<0.000000e+00> : vector<8x1024xf32>
    %3 = tpu.matmul %2, %1, %cst {dimension_numbers = #tpu.dot_dimension_numbers<[1], [0], [0], [1], [0, 0, 1, 1], [], []>} : vector<8x32xf32>, vector<32x1024xf32>, vector<8x1024xf32> -> vector<8x1024xf32>
    %c0_4 = arith.constant 0 : index
    %c0_5 = arith.constant 0 : index
    %4 = vector.load %arg4[%c0_4, %c0_5] : memref<8x1xf32, #tpu.memory_space<vmem>>, vector<8x1xf32>
    %5 = vector.broadcast %4 : vector<8x1xf32> to vector<8x1024xf32>
    %6 = arith.addf %3, %5 : vector<8x1024xf32>
    %c0_6 = arith.constant 0 : index
    %c0_7 = arith.constant 0 : index
    %c0_8 = arith.constant 0 : index
    %7 = vector.load %arg5[%c0_6, %c0_7, %c0_8] : memref<1x8x1024xf32, #tpu.memory_space<vmem>>, vector<1x8x1024xf32>
    %8 = vector.shape_cast %7 : vector<1x8x1024xf32> to vector<8x1024xf32>
    %9 = vector.shape_cast %6 : vector<8x1024xf32> to vector<1x8x1024xf32>
    tpu.vector_store %arg5[%c0_6, %c0_7, %c0_8], %9 {strides = array<i32>} : memref<1x8x1024xf32, #tpu.memory_space<vmem>>, vector<1x8x1024xf32>,
    return
  }
  func.func @transform_0(%arg0: i32, %arg1: i32) -> (i32, i32, i32) {
    %c0_i32 = arith.constant 0 : i32
    %c0_i32_0 = arith.constant 0 : i32
    return %arg0, %c0_i32, %arg1 : i32, i32, i32
  }
  func.func @transform_1(%arg0: i32, %arg1: i32) -> (i32, i32) {
    %c0_i32 = arith.constant 0 : i32
    %c0_i32_0 = arith.constant 0 : i32
    %c0_i32_1 = arith.constant 0 : i32
    return %c0_i32, %c0_i32_0 : i32, i32
  }
  func.func @transform_2(%arg0: i32, %arg1: i32) -> (i32, i32) {
    %c0_i32 = arith.constant 0 : i32
    %c0_i32_0 = arith.constant 0 : i32
    %c0_i32_1 = arith.constant 0 : i32
    return %c0_i32, %c0_i32_0 : i32, i32
  }
  func.func @transform_3(%arg0: i32, %arg1: i32) -> (i32, i32, i32) {
    %c0_i32 = arith.constant 0 : i32
    %c0_i32_0 = arith.constant 0 : i32
    return %arg0, %c0_i32, %arg1 : i32, i32, i32
  }
}

module attributes {stable_mosaic.version = 11 : i64} {
  func.func @esa_tail_kernel(%arg0: i32, %arg1: i32, %arg2: memref<1x32x1024xf32, #tpu.memory_space<vmem>>, %arg3: memref<1x8x16xf32, #tpu.memory_space<vmem>>, %arg4: memref<16x1024xf32, #tpu.memory_space<vmem>>, %arg5: memref<8x32xf32, #tpu.memory_space<vmem>>, %arg6: memref<8x1xf32, #tpu.memory_space<vmem>>, %arg7: memref<32x8xf32, #tpu.memory_space<vmem>>, %arg8: memref<32x1xf32, #tpu.memory_space<vmem>>, %arg9: memref<1x32x1024xf32, #tpu.memory_space<vmem>>) attributes {dimension_semantics = [#tpu.dimension_semantics<parallel>, #tpu.dimension_semantics<parallel>], iteration_bounds = array<i64: 2, 1>, scalar_prefetch = 0 : i64, scratch_operands = 0 : i64, tpu.core_type = #tpu.core_type<tc>, window_params = [{transform_indices = @transform_0, window_bounds = array<i64: 1, 32, 1024>}, {transform_indices = @transform_1, window_bounds = array<i64: 1, 8, 16>}, {transform_indices = @transform_2, window_bounds = array<i64: 16, 1024>}, {pipeline_mode = #tpu.pipeline_mode<synchronous>, transform_indices = @transform_3, window_bounds = array<i64: 8, 32>}, {pipeline_mode = #tpu.pipeline_mode<synchronous>, transform_indices = @transform_4, window_bounds = array<i64: 8, 1>}, {pipeline_mode = #tpu.pipeline_mode<synchronous>, transform_indices = @transform_5, window_bounds = array<i64: 32, 8>}, {pipeline_mode = #tpu.pipeline_mode<synchronous>, transform_indices = @transform_6, window_bounds = array<i64: 32, 1>}, {transform_indices = @transform_7, window_bounds = array<i64: 1, 32, 1024>}]} {
    %c0 = arith.constant 0 : index
    %c0_0 = arith.constant 0 : index
    %c0_1 = arith.constant 0 : index
    %0 = vector.load %arg2[%c0, %c0_0, %c0_1] : memref<1x32x1024xf32, #tpu.memory_space<vmem>>, vector<1x32x1024xf32>
    %1 = vector.shape_cast %0 : vector<1x32x1024xf32> to vector<32x1024xf32>
    %c0_2 = arith.constant 0 : index
    %c0_3 = arith.constant 0 : index
    %2 = vector.load %arg5[%c0_2, %c0_3] : memref<8x32xf32, #tpu.memory_space<vmem>>, vector<8x32xf32>
    %cst = arith.constant dense<0.000000e+00> : vector<8x1024xf32>
    %3 = tpu.matmul %2, %1, %cst {dimension_numbers = #tpu.dot_dimension_numbers<[1], [0], [0], [1], [0, 0, 1, 1], [], []>} : vector<8x32xf32>, vector<32x1024xf32>, vector<8x1024xf32> -> vector<8x1024xf32>
    %c0_4 = arith.constant 0 : index
    %c0_5 = arith.constant 0 : index
    %4 = vector.load %arg6[%c0_4, %c0_5] : memref<8x1xf32, #tpu.memory_space<vmem>>, vector<8x1xf32>
    %5 = vector.broadcast %4 : vector<8x1xf32> to vector<8x1024xf32>
    %6 = arith.addf %3, %5 : vector<8x1024xf32>
    %c0_6 = arith.constant 0 : index
    %c0_7 = arith.constant 0 : index
    %c0_8 = arith.constant 0 : index
    %7 = vector.load %arg3[%c0_6, %c0_7, %c0_8] : memref<1x8x16xf32, #tpu.memory_space<vmem>>, vector<1x8x16xf32>
    %8 = vector.shape_cast %7 : vector<1x8x16xf32> to vector<8x16xf32>
    %c0_9 = arith.constant 0 : index
    %c0_10 = arith.constant 0 : index
    %9 = vector.load %arg4[%c0_9, %c0_10] : memref<16x1024xf32, #tpu.memory_space<vmem>>, vector<16x1024xf32>
    %cst_11 = arith.constant dense<0.000000e+00> : vector<8x1024xf32>
    %10 = tpu.matmul %8, %9, %cst_11 {dimension_numbers = #tpu.dot_dimension_numbers<[1], [0], [0], [1], [0, 0, 1, 1], [], []>} : vector<8x16xf32>, vector<16x1024xf32>, vector<8x1024xf32> -> vector<8x1024xf32>
    %c0_12 = arith.constant 0 : index
    %c0_13 = arith.constant 0 : index
    %11 = vector.load %arg7[%c0_12, %c0_13] : memref<32x8xf32, #tpu.memory_space<vmem>>, vector<32x8xf32>
    %12 = arith.addf %10, %6 : vector<8x1024xf32>
    %cst_14 = arith.constant dense<0.000000e+00> : vector<32x1024xf32>
    %13 = tpu.matmul %11, %12, %cst_14 {dimension_numbers = #tpu.dot_dimension_numbers<[1], [0], [0], [1], [0, 0, 1, 1], [], []>} : vector<32x8xf32>, vector<8x1024xf32>, vector<32x1024xf32> -> vector<32x1024xf32>
    %c0_15 = arith.constant 0 : index
    %c0_16 = arith.constant 0 : index
    %14 = vector.load %arg8[%c0_15, %c0_16] : memref<32x1xf32, #tpu.memory_space<vmem>>, vector<32x1xf32>
    %15 = vector.broadcast %14 : vector<32x1xf32> to vector<32x1024xf32>
    %16 = arith.addf %13, %15 : vector<32x1024xf32>
    %17 = arith.negf %16 : vector<32x1024xf32>
    %18 = math.exp %17 : vector<32x1024xf32>
    %cst_17 = arith.constant 1.000000e+00 : f32
    %19 = vector.broadcast %cst_17 : f32 to vector<32x1024xf32>
    %20 = arith.addf %19, %18 : vector<32x1024xf32>
    %21 = arith.divf %19, %20 : vector<32x1024xf32>
    %22 = arith.mulf %1, %21 : vector<32x1024xf32>
    %c0_18 = arith.constant 0 : index
    %c0_19 = arith.constant 0 : index
    %c0_20 = arith.constant 0 : index
    %23 = vector.load %arg9[%c0_18, %c0_19, %c0_20] : memref<1x32x1024xf32, #tpu.memory_space<vmem>>, vector<1x32x1024xf32>
    %24 = vector.shape_cast %23 : vector<1x32x1024xf32> to vector<32x1024xf32>
    %25 = vector.shape_cast %22 : vector<32x1024xf32> to vector<1x32x1024xf32>
    tpu.vector_store %arg9[%c0_18, %c0_19, %c0_20], %25 {strides = array<i32>} : memref<1x32x1024xf32, #tpu.memory_space<vmem>>, vector<1x32x1024xf32>,
    return
  }
  func.func @transform_0(%arg0: i32, %arg1: i32) -> (i32, i32, i32) {
    %c0_i32 = arith.constant 0 : i32
    %c0_i32_0 = arith.constant 0 : i32
    return %arg0, %c0_i32, %arg1 : i32, i32, i32
  }
  func.func @transform_1(%arg0: i32, %arg1: i32) -> (i32, i32, i32) {
    %c0_i32 = arith.constant 0 : i32
    %c0_i32_0 = arith.constant 0 : i32
    %c0_i32_1 = arith.constant 0 : i32
    return %arg0, %c0_i32, %c0_i32_0 : i32, i32, i32
  }
  func.func @transform_2(%arg0: i32, %arg1: i32) -> (i32, i32) {
    %c0_i32 = arith.constant 0 : i32
    %c0_i32_0 = arith.constant 0 : i32
    return %c0_i32, %arg1 : i32, i32
  }
  func.func @transform_3(%arg0: i32, %arg1: i32) -> (i32, i32) {
    %c0_i32 = arith.constant 0 : i32
    %c0_i32_0 = arith.constant 0 : i32
    %c0_i32_1 = arith.constant 0 : i32
    return %c0_i32, %c0_i32_0 : i32, i32
  }
  func.func @transform_4(%arg0: i32, %arg1: i32) -> (i32, i32) {
    %c0_i32 = arith.constant 0 : i32
    %c0_i32_0 = arith.constant 0 : i32
    %c0_i32_1 = arith.constant 0 : i32
    return %c0_i32, %c0_i32_0 : i32, i32
  }
  func.func @transform_5(%arg0: i32, %arg1: i32) -> (i32, i32) {
    %c0_i32 = arith.constant 0 : i32
    %c0_i32_0 = arith.constant 0 : i32
    %c0_i32_1 = arith.constant 0 : i32
    return %c0_i32, %c0_i32_0 : i32, i32
  }
  func.func @transform_6(%arg0: i32, %arg1: i32) -> (i32, i32) {
    %c0_i32 = arith.constant 0 : i32
    %c0_i32_0 = arith.constant 0 : i32
    %c0_i32_1 = arith.constant 0 : i32
    return %c0_i32, %c0_i32_0 : i32, i32
  }
  func.func @transform_7(%arg0: i32, %arg1: i32) -> (i32, i32, i32) {
    %c0_i32 = arith.constant 0 : i32
    %c0_i32_0 = arith.constant 0 : i32
    return %arg0, %c0_i32, %arg1 : i32, i32, i32
  }
}

</mosaic_0001>

<bundles_post_ra>
// kernel: esa_forward.2
= control target key start
LH: loop header
LB: loop body
LE: loop exit
PB: predicated region body
PF: predicated region fallthrough
CT: control target
= control target key end

     0   :  { %s600_s12 = smov 0   ;;  %s602_s13 = smov 0   ;;  %s685_s0 = inlined_call_operand.vmem [shape: f32[2,32,1024], index: 0, kind: input, shape index: {}]   ;;  %s686_s1 = inlined_call_operand.vmem [shape: f32[8,32], index: 1, kind: input, shape index: {}]   ;;  %s687_s2 = inlined_call_operand.vmem [shape: f32[8,1], index: 2, kind: input, shape index: {}]   ;;  %s688_s3 = inlined_call_operand.vmem [shape: f32[2,8,1024], index: 3, kind: output, shape index: {}]  }
   0x1   :  { %s604_s14 = smov 0  }
   0x2 LB: > { %s25_s15 = sadd.s32 1, %s573_s13  ;;  %p512_p0 = scmp.ge.s32.totalorder %s577_s14, 1  ;;  %s577_s14 = sphi %s604_s14, %s13_s14   ;;  %s573_s13 = sphi %s602_s13, %s690_s13   ;;  %s569_s12 = sphi %s600_s12, %s689_s12  }
   0x3   : > { %p27_p1 = scmp.ge.s32.totalorder %s25_s15, 2  ;;  %p158_p2 = scmp.lt.s32.totalorder %s577_s14, 3 }
   0x5   : > { %s692_s15 = smov (%p27_p1, %s25_s15), 0  ;;  %p159_p3 = pnand %p512_p0, %p158_p2 }
   0x6   : > { %p191_p4 = scmp.lt.s32.totalorder (!%p159_p3), %s569_s12, 1 }
   0x7   : > { %162 = sbr.rel (%p159_p3) target bundleno = 168 (0xa8), region = 32 }
   0xc   : > { %v243_v0 = vld [vmem:[%s687_s2] sm:$0xff]  ;;  %v579_v1 = vmov 0   ;;  %s694_s12 = smov (!%p191_p4, %s569_s12), 1  ;;  %vm249_vm0 = vcmask 261120  }
   0xd   : > { %554 = vset.pattern.permute.xlu0 %v579_v1  ;;  %s527_s18 = sshll.u32 %s694_s12, 8  ;;  %v242_v14 = vld [vmem:[%s686_s1] sm:$0xff]  ;;  %s528_s24 = sshll.u32 %s694_s12, 6 }
   0xe   : > { %246 = vperm.xlu0 %554, %v243_v0   ;;  %s627_s21 = scalar_lea.vmem %s685_s0, %s527_s18  ;;  %s208_s27 = scalar_lea.vmem %s688_s3, %s528_s24 }
   0xf   : > { %v236_v2 = vld [vmem:[%s627_s21 + $0xd0] sm:$0xff]  ;;  %v237_v3 = vld [vmem:[%s627_s21 + $0xd8] sm:$0xff]  ;;  %v234_v8 = vld [vmem:[%s627_s21 + $0xc0] sm:$0xff] }
  0x10   : > { %v228_v4 = vld [vmem:[%s627_s21 + $0x90] sm:$0xff]  ;;  %305 = vmatpush.msra.mxu2 %v236_v2  ;;  %325 = vmatpush.msra.mxu3 %v237_v3  ;;  %v229_v5 = vld [vmem:[%s627_s21 + $0x98] sm:$0xff]  ;;  %v235_v9 = vld [vmem:[%s627_s21 + $0xc8] sm:$0xff] }
  0x11   : > { %v220_v6 = vld [vmem:[%s627_s21 + $0x50] sm:$0xff]  ;;  %v221_v7 = vld [vmem:[%s627_s21 + $0x58] sm:$0xff]  ;;  %265 = vmatpush.msra.mxu0 %v234_v8  ;;  %285 = vmatpush.msra.mxu1 %v235_v9  ;;  %v226_v12 = vld [vmem:[%s627_s21 + $0x80] sm:$0xff] }
  0x12   : > { %306 = vmatpush.msra.mxu2 %v228_v4  ;;  %326 = vmatpush.msra.mxu3 %v229_v5  ;;  %v212_v10 = vld [vmem:[%s627_s21 + $0x10] sm:$0xff]  ;;  %v213_v11 = vld [vmem:[%s627_s21 + $0x18] sm:$0xff]  ;;  %v227_v13 = vld [vmem:[%s627_s21 + $0x88] sm:$0xff] }
  0x13   : > { %v240_v15 = vld [vmem:[%s627_s21 + $0xf0] sm:$0xff]  ;;  %v241_v16 = vld [vmem:[%s627_s21 + $0xf8] sm:$0xff]  ;;  %266 = vmatpush.msra.mxu0 %v226_v12  ;;  %286 = vmatpush.msra.mxu1 %v227_v13  ;;  %v218_v17 = vld [vmem:[%s627_s21 + $0x40] sm:$0xff] }
  0x14   : > { %307 = vmatpush.msra.mxu2 %v220_v6  ;;  %327 = vmatpush.msra.mxu3 %v221_v7  ;;  %v219_v18 = vld [vmem:[%s627_s21 + $0x48] sm:$0xff]  ;;  %v232_v19 = vld [vmem:[%s627_s21 + $0xb0] sm:$0xff]  ;;  %v233_v20 = vld [vmem:[%s627_s21 + $0xb8] sm:$0xff] }
  0x15   : > { %v210_v21 = vld [vmem:[%s627_s21] sm:$0xff]  ;;  %v211_v22 = vld [vmem:[%s627_s21 + $0x8] sm:$0xff]  ;;  %267 = vmatpush.msra.mxu0 %v218_v17  ;;  %287 = vmatpush.msra.mxu1 %v219_v18  ;;  %v224_v23 = vld [vmem:[%s627_s21 + $0x70] sm:$0xff] }
  0x16   : > { %308 = vmatpush.msra.mxu2 %v212_v10  ;;  %328 = vmatpush.msra.mxu3 %v213_v11  ;;  %v225_v24 = vld [vmem:[%s627_s21 + $0x78] sm:$0xff]  ;;  %v238_v25 = vld [vmem:[%s627_s21 + $0xe0] sm:$0xff]  ;;  %v239_v26 = vld [vmem:[%s627_s21 + $0xe8] sm:$0xff] }
  0x17   : > { %519 = vmatmul.msk.f32.vlgmr.msra.gmra.mxu2 %vm249_vm0, %v242_v14  ;;  %520 = vmatmul.msk.f32.vlgmr.msra.gmra.mxu3 %vm249_vm0, %v242_v14  ;;  %v216_v27 = vld [vmem:[%s627_s21 + $0x30] sm:$0xff]  ;;  %v217_v28 = vld [vmem:[%s627_s21 + $0x38] sm:$0xff]  ;;  %v230_v29 = vld [vmem:[%s627_s21 + $0xa0] sm:$0xff] }
  0x18   : > { %385 = vmatpush.msrb.mxu2 %v240_v15  ;;  %405 = vmatpush.msrb.mxu3 %v241_v16  ;;  %v231_v30 = vld [vmem:[%s627_s21 + $0xa8] sm:$0xff]  ;;  %v222_v31 = vld [vmem:[%s627_s21 + $0x60] sm:$0xff] }
  0x19   : > { %268 = vmatpush.msra.mxu0 %v210_v21  ;;  %288 = vmatpush.msra.mxu1 %v211_v22  ;;  %v223_v32 = vld [vmem:[%s627_s21 + $0x68] sm:$0xff]  ;;  %v214_v33 = vld [vmem:[%s627_s21 + $0x20] sm:$0xff] }
  0x1a   : > { %386 = vmatpush.msrb.mxu2 %v232_v19  ;;  %406 = vmatpush.msrb.mxu3 %v233_v20  ;;  %v215_v34 = vld [vmem:[%s627_s21 + $0x28] sm:$0xff] }
  0x1b   : > { %517 = vmatmul.msk.f32.vlgmr.msra.gmra.mxu0 %vm249_vm0, %v242_v14  ;;  %518 = vmatmul.msk.f32.vlgmr.msra.gmra.mxu1 %vm249_vm0, %v242_v14 }
  0x1c   : > { %387 = vmatpush.msrb.mxu2 %v224_v23  ;;  %407 = vmatpush.msrb.mxu3 %v225_v24 }
  0x1d   : > { %345 = vmatpush.msrb.mxu0 %v238_v25  ;;  %365 = vmatpush.msrb.mxu1 %v239_v26 }
  0x1e   : > { %388 = vmatpush.msrb.mxu2 %v216_v27  ;;  %408 = vmatpush.msrb.mxu3 %v217_v28 }
  0x1f   : > { %346 = vmatpush.msrb.mxu0 %v230_v29  ;;  %366 = vmatpush.msrb.mxu1 %v231_v30 }
  0x20   : > { %523 = vmatmul.msk.f32.vlgmr.msrb.gmra.mxu2 %vm249_vm0, %v242_v14  ;;  %524 = vmatmul.msk.f32.vlgmr.msrb.gmra.mxu3 %vm249_vm0, %v242_v14 }
  0x21   : > { %347 = vmatpush.msrb.mxu0 %v222_v31  ;;  %367 = vmatpush.msrb.mxu1 %v223_v32 }
  0x23   : > { %348 = vmatpush.msrb.mxu0 %v214_v33  ;;  %368 = vmatpush.msrb.mxu1 %v215_v34 }
  0x24   : > { %521 = vmatmul.msk.f32.vlgmr.msrb.gmra.mxu0 %vm249_vm0, %v242_v14  ;;  %522 = vmatmul.msk.f32.vlgmr.msrb.gmra.mxu1 %vm249_vm0, %v242_v14 }
  0x80   : > { %v247_v35 = vpop.permute.xlu0 %246 }
  0x98   : > { %v270_v36 = vpop.f32.mrf.mxu0  ;;  %v290_v37 = vpop.f32.mrf.mxu1 }
  0x99   : > { %v271_v38 = vadd.f32 %v270_v36, %v247_v35  ;;  %v291_v39 = vadd.f32 %v290_v37, %v247_v35 }
  0x9a   : > { %v310_v40 = vpop.f32.mrf.mxu2  ;;  %v330_v41 = vpop.f32.mrf.mxu3 }
  0x9b   : > { %v311_v42 = vadd.f32 %v310_v40, %v247_v35  ;;  %v331_v43 = vadd.f32 %v330_v41, %v247_v35  ;;  %413 = vst [vmem:[%s208_s27] sm:$0xff] %v271_v38 }
  0x9c   : > { %414 = vst [vmem:[%s208_s27 + $0x8] sm:$0xff] %v291_v39 }
  0x9d   : > { %415 = vst [vmem:[%s208_s27 + $0x10] sm:$0xff] %v311_v42 }
  0x9e   : > { %416 = vst [vmem:[%s208_s27 + $0x18] sm:$0xff] %v331_v43 }
  0xa1   : > { %v350_v44 = vpop.f32.mrf.mxu0  ;;  %v370_v45 = vpop.f32.mrf.mxu1 }
  0xa2   : > { %v351_v46 = vadd.f32 %v350_v44, %v247_v35  ;;  %v371_v47 = vadd.f32 %v370_v45, %v247_v35 }
  0xa3   : > { %v390_v48 = vpop.f32.mrf.mxu2  ;;  %v410_v49 = vpop.f32.mrf.mxu3 }
  0xa4   : > { %417 = vst [vmem:[%s208_s27 + $0x20] sm:$0xff] %v351_v46  ;;  %v391_v50 = vadd.f32 %v390_v48, %v247_v35  ;;  %v411_v51 = vadd.f32 %v410_v49, %v247_v35 }
  0xa5   : > { %418 = vst [vmem:[%s208_s27 + $0x28] sm:$0xff] %v371_v47 }
  0xa6   : > { %419 = vst [vmem:[%s208_s27 + $0x30] sm:$0xff] %v391_v50 }
  0xa7   : > { %420 = vst [vmem:[%s208_s27 + $0x38] sm:$0xff] %v411_v51 }
  0xa8 PF: > { %s13_s14 = sadd.s32 1, %s577_s14   ;;  %s689_s12 = smov %s573_s13 }
  0xa9   : > { %p10_p5 = scmp.ge.s32.totalorder %s13_s14, 4   ;;  %s690_s13 = smov %s692_s15 }
  0xab   :  { %12 = sbr.rel (!%p10_p5) target bundleno = 2 (0x2), region = 62 }

// kernel: esa_forward.3
= control target key start
LH: loop header
LB: loop body
LE: loop exit
PB: predicated region body
PF: predicated region fallthrough
CT: control target
= control target key end

     0   :  { %s2138_s24 = smov 0   ;;  %s2140_s25 = smov 0   ;;  %s3007_s0 = inlined_call_operand.vmem [shape: f32[2,32,1024], index: 0, kind: input, shape index: {}]   ;;  %s3008_s1 = inlined_call_operand.vmem [shape: f32[2,8,16], index: 1, kind: input, shape index: {}]   ;;  %s3009_s2 = inlined_call_operand.vmem [shape: f32[16,1024], index: 2, kind: input, shape index: {}]   ;;  %s3010_s3 = inlined_call_operand.vmem [shape: f32[8,32], index: 3, kind: input, shape index: {}]   ;;  %s3011_s4 = inlined_call_operand.vmem [shape: f32[8,1], index: 4, kind: input, shape index: {}]   ;;  %s3012_s5 = inlined_call_operand.vmem [shape: f32[32,8], index: 5, kind: input, shape index: {}]   ;;  %s3013_s6 = inlined_call_operand.vmem [shape: f32[32,1], index: 6, kind: input, shape index: {}]   ;;  %s3014_s7 = inlined_call_operand.vmem [shape: f32[2,32,1024], index: 7, kind: output, shape index: {}]  }
   0x1   :  { %s2142_s26 = smov 0  }
   0x2 LB: > { %s29_s27 = sadd.s32 1, %s2091_s25  ;;  %p1805_p0 = scmp.ge.s32.totalorder %s2095_s26, 1  ;;  %s2095_s26 = sphi %s2142_s26, %s17_s26   ;;  %s2091_s25 = sphi %s2140_s25, %s3092_s25   ;;  %s2087_s24 = sphi %s2138_s24, %s3091_s24  }
   0x3   : > { %p31_p1 = scmp.ge.s32.totalorder %s29_s27, 2  ;;  %p278_p2 = scmp.lt.s32.totalorder %s2095_s26, 3 }
   0x5   : > { %s3094_s27 = smov (%p31_p1, %s29_s27), 0  ;;  %p279_p3 = pnand %p1805_p0, %p278_p2 }
   0x6   : > { %p328_p4 = scmp.lt.s32.totalorder (!%p279_p3), %s2087_s24, 1 }
   0x7   : > { %282 = sbr.rel (%p279_p3) target bundleno = 463 (0x1cf), region = 48 }
   0xc   : > { %v2097_v0 = vmov 0   ;;  %s3096_s24 = smov (!%p328_p4, %s2087_s24), 1  ;;  %v390_v1 = vld [vmem:[%s3011_s4] sm:$0xff]  ;;  %vm396_vm0 = vcmask 261120   ;;  %v570_v36 = vld [vmem:[%s3009_s2 + $0x48] sm:$0xff]  ;;  %v571_v37 = vld [vmem:[%s3009_s2 + $0x50] sm:$0xff] }
   0xd   : > { %1920 = vset.pattern.permute.xlu0 %v2097_v0  ;;  %1921 = vset.pattern.permute.xlu1 %v2097_v0  ;;  %s1893_s30 = sshll.u32 %s3096_s24, 8  ;;  %v389_v18 = vld [vmem:[%s3010_s3] sm:$0xff]  ;;  %s1808_s17 = sshll.u32 %s3096_s24, 3  ;;  %v572_v38 = vld [vmem:[%s3009_s2 + $0x58] sm:$0xff]  ;;  %v562_v40 = vld [vmem:[%s3009_s2 + $0x8] sm:$0xff]  ;;  %vm581_vm1 = vcmask 130048  }
   0xe   : > { %1922 = vset.pattern.permute.xlu2 %v2097_v0  ;;  %393 = vperm.xlu0 %1920, %v390_v1   ;;  %s2167_s10 = scalar_lea.vmem %s3007_s0, %s1893_s30  ;;  %v569_v35 = vld [vmem:[%s3009_s2 + $0x40] sm:$0xff]  ;;  %v563_v41 = vld [vmem:[%s3009_s2 + $0x10] sm:$0xff]  ;;  %v564_v42 = vld [vmem:[%s3009_s2 + $0x18] sm:$0xff]  ;;  %s340_s15 = scalar_lea.vmem %s3008_s1, %s1808_s17  ;;  %vm769_vm2 = vcmask 64512  }
   0xf   : > { %v381_v2 = vld [vmem:[%s2167_s10 + $0xc0] sm:$0xff]  ;;  %v382_v3 = vld [vmem:[%s2167_s10 + $0xc8] sm:$0xff]  ;;  %v383_v4 = vld [vmem:[%s2167_s10 + $0xd0] sm:$0xff]  ;;  %s2401_s16 = scalar_lea.vmem %s3014_s7, %s1893_s30 }
  0x10   : > { %412 = vmatpush.msra.mxu0 %v381_v2  ;;  %432 = vmatpush.msra.mxu1 %v382_v3  ;;  %v384_v5 = vld [vmem:[%s2167_s10 + $0xd8] sm:$0xff]  ;;  %v2174_v6 = vld [vmem:[%s2167_s10 + $0x80] sm:$0xff]  ;;  %v2177_v7 = vld [vmem:[%s2167_s10 + $0x88] sm:$0xff] }
  0x11   : > { %452 = vmatpush.msra.mxu2 %v383_v4  ;;  %472 = vmatpush.msra.mxu3 %v384_v5  ;;  %v375_v8 = vld [vmem:[%s2167_s10 + $0x90] sm:$0xff]  ;;  %v376_v9 = vld [vmem:[%s2167_s10 + $0x98] sm:$0xff]  ;;  %v2182_v10 = vld [vmem:[%s2167_s10 + $0x40] sm:$0xff] }
  0x12   : > { %413 = vmatpush.msra.mxu0 %v2174_v6  ;;  %433 = vmatpush.msra.mxu1 %v2177_v7  ;;  %v2187_v11 = vld [vmem:[%s2167_s10 + $0x48] sm:$0xff]  ;;  %v2190_v12 = vld [vmem:[%s2167_s10 + $0x50] sm:$0xff]  ;;  %v2193_v13 = vld [vmem:[%s2167_s10 + $0x58] sm:$0xff] }
  0x13   : > { %453 = vmatpush.msra.mxu2 %v375_v8  ;;  %473 = vmatpush.msra.mxu3 %v376_v9  ;;  %v2196_v14 = vld [vmem:[%s2167_s10] sm:$0xff]  ;;  %v2199_v15 = vld [vmem:[%s2167_s10 + $0x8] sm:$0xff]  ;;  %v2204_v16 = vld [vmem:[%s2167_s10 + $0x10] sm:$0xff] }
  0x14   : > { %414 = vmatpush.msra.mxu0 %v2182_v10  ;;  %434 = vmatpush.msra.mxu1 %v2187_v11  ;;  %v2207_v17 = vld [vmem:[%s2167_s10 + $0x18] sm:$0xff]  ;;  %v385_v19 = vld [vmem:[%s2167_s10 + $0xe0] sm:$0xff]  ;;  %v386_v20 = vld [vmem:[%s2167_s10 + $0xe8] sm:$0xff] }
  0x15   : > { %454 = vmatpush.msra.mxu2 %v2190_v12  ;;  %474 = vmatpush.msra.mxu3 %v2193_v13  ;;  %v387_v21 = vld [vmem:[%s2167_s10 + $0xf0] sm:$0xff]  ;;  %v388_v22 = vld [vmem:[%s2167_s10 + $0xf8] sm:$0xff]  ;;  %v377_v23 = vld [vmem:[%s2167_s10 + $0xa0] sm:$0xff] }
  0x16   : > { %415 = vmatpush.msra.mxu0 %v2196_v14  ;;  %435 = vmatpush.msra.mxu1 %v2199_v15  ;;  %v378_v24 = vld [vmem:[%s2167_s10 + $0xa8] sm:$0xff]  ;;  %v379_v25 = vld [vmem:[%s2167_s10 + $0xb0] sm:$0xff]  ;;  %v380_v26 = vld [vmem:[%s2167_s10 + $0xb8] sm:$0xff] }
  0x17   : > { %455 = vmatpush.msra.mxu2 %v2204_v16  ;;  %475 = vmatpush.msra.mxu3 %v2207_v17  ;;  %v369_v27 = vld [vmem:[%s2167_s10 + $0x60] sm:$0xff]  ;;  %v370_v28 = vld [vmem:[%s2167_s10 + $0x68] sm:$0xff]  ;;  %v371_v29 = vld [vmem:[%s2167_s10 + $0x70] sm:$0xff] }
  0x18   : > { %1811 = vmatmul.msk.f32.vlgmr.msra.gmra.mxu0 %vm396_vm0, %v389_v18  ;;  %1812 = vmatmul.msk.f32.vlgmr.msra.gmra.mxu1 %vm396_vm0, %v389_v18  ;;  %v372_v30 = vld [vmem:[%s2167_s10 + $0x78] sm:$0xff]  ;;  %v361_v31 = vld [vmem:[%s2167_s10 + $0x20] sm:$0xff]  ;;  %v362_v32 = vld [vmem:[%s2167_s10 + $0x28] sm:$0xff] }
  0x19   : > { %1813 = vmatmul.msk.f32.vlgmr.msra.gmra.mxu2 %vm396_vm0, %v389_v18  ;;  %1814 = vmatmul.msk.f32.vlgmr.msra.gmra.mxu3 %vm396_vm0, %v389_v18  ;;  %v363_v33 = vld [vmem:[%s2167_s10 + $0x30] sm:$0xff]  ;;  %v364_v34 = vld [vmem:[%s2167_s10 + $0x38] sm:$0xff]  ;;  %v561_v39 = vld [vmem:[%s3009_s2] sm:$0xff] }
  0x1a   : > { %492 = vmatpush.msrb.mxu0 %v385_v19  ;;  %512 = vmatpush.msrb.mxu1 %v386_v20  ;;  %v573_v43 = vld [vmem:[%s3009_s2 + $0x60] sm:$0xff]  ;;  %v574_v44 = vld [vmem:[%s3009_s2 + $0x68] sm:$0xff]  ;;  %v575_v45 = vld [vmem:[%s3009_s2 + $0x70] sm:$0xff] }
  0x1b   : > { %532 = vmatpush.msrb.mxu2 %v387_v21  ;;  %552 = vmatpush.msrb.mxu3 %v388_v22  ;;  %v576_v46 = vld [vmem:[%s3009_s2 + $0x78] sm:$0xff]  ;;  %v560_v47 = vld [vmem:[%s340_s15] sm:$0xff]  ;;  %v566_v49 = vld [vmem:[%s3009_s2 + $0x28] sm:$0xff] }
  0x1c   : > { %493 = vmatpush.msrb.mxu0 %v377_v23  ;;  %513 = vmatpush.msrb.mxu1 %v378_v24  ;;  %v565_v48 = vld [vmem:[%s3009_s2 + $0x20] sm:$0xff]  ;;  %v567_v50 = vld [vmem:[%s3009_s2 + $0x30] sm:$0xff]  ;;  %v568_v51 = vld [vmem:[%s3009_s2 + $0x38] sm:$0xff] }
  0x1d   : > { %533 = vmatpush.msrb.mxu2 %v379_v25  ;;  %553 = vmatpush.msrb.mxu3 %v380_v26  ;;  %v745_v52 = vld [vmem:[%s3013_s6] sm:$0xff]  ;;  %v746_v57 = vld [vmem:[%s3013_s6 + $0x8] sm:$0xff]  ;;  %v747_v1 = vld [vmem:[%s3013_s6 + $0x10] sm:$0xff] }
  0x1e   : > { %494 = vmatpush.msrb.mxu0 %v369_v27  ;;  %514 = vmatpush.msrb.mxu1 %v370_v28  ;;  %v577_v8 = vld [vmem:[%s3012_s5] sm:$0xff] }
  0x1f   : > { %534 = vmatpush.msrb.mxu2 %v371_v29  ;;  %554 = vmatpush.msrb.mxu3 %v372_v30  ;;  %v578_v29 = vld [vmem:[%s3012_s5 + $0x8] sm:$0xff] }
  0x20   : > { %495 = vmatpush.msrb.mxu0 %v361_v31  ;;  %515 = vmatpush.msrb.mxu1 %v362_v32 }
  0x21   : > { %535 = vmatpush.msrb.mxu2 %v363_v33  ;;  %555 = vmatpush.msrb.mxu3 %v364_v34 }
  0x22   : > { %1815 = vmatmul.msk.f32.vlgmr.msrb.gmra.mxu0 %vm396_vm0, %v389_v18  ;;  %1816 = vmatmul.msk.f32.vlgmr.msrb.gmra.mxu1 %vm396_vm0, %v389_v18 }
  0x23   : > { %1817 = vmatmul.msk.f32.vlgmr.msrb.gmra.mxu2 %vm396_vm0, %v389_v18  ;;  %1818 = vmatmul.msk.f32.vlgmr.msrb.gmra.mxu3 %vm396_vm0, %v389_v18 }
  0x24   : > { %599 = vmatpush.msra.mxu0 %v569_v35  ;;  %619 = vmatpush.msra.mxu1 %v570_v36  ;;  %v579_v36 = vld [vmem:[%s3012_s5 + $0x10] sm:$0xff] }
  0x25   : > { %639 = vmatpush.msra.mxu2 %v571_v37  ;;  %659 = vmatpush.msra.mxu3 %v572_v38  ;;  %v580_v37 = vld [vmem:[%s3012_s5 + $0x18] sm:$0xff] }
  0x26   : > { %600 = vmatpush.msra.mxu0 %v561_v39  ;;  %620 = vmatpush.msra.mxu1 %v562_v40  ;;  %v748_v38 = vld [vmem:[%s3013_s6 + $0x18] sm:$0xff] }
  0x27   : > { %640 = vmatpush.msra.mxu2 %v563_v41  ;;  %660 = vmatpush.msra.mxu3 %v564_v42 }
  0x28   : > { %679 = vmatpush.msrb.mxu0 %v573_v43  ;;  %699 = vmatpush.msrb.mxu1 %v574_v44 }
  0x29   : > { %719 = vmatpush.msrb.mxu2 %v575_v45  ;;  %739 = vmatpush.msrb.mxu3 %v576_v46 }
  0x2a   : > { %1819 = vmatmul.msk.f32.vlgmr.msra.gmra.mxu0 %vm581_vm1, %v560_v47  ;;  %1820 = vmatmul.msk.f32.vlgmr.msra.gmra.mxu1 %vm581_vm1, %v560_v47 }
  0x2b   : > { %1821 = vmatmul.msk.f32.vlgmr.msra.gmra.mxu2 %vm581_vm1, %v560_v47  ;;  %1822 = vmatmul.msk.f32.vlgmr.msra.gmra.mxu3 %vm581_vm1, %v560_v47 }
  0x2c   : > { %680 = vmatpush.msrb.mxu0 %v565_v48  ;;  %700 = vmatpush.msrb.mxu1 %v566_v49 }
  0x2d   : > { %720 = vmatpush.msrb.mxu2 %v567_v50  ;;  %740 = vmatpush.msrb.mxu3 %v568_v51 }
  0x2e   : > { %751 = vperm.xlu0 %1920, %v745_v52   ;;  %756 = vperm.xlu1 %1921, %v746_v57  }
  0x2f   : > { %766 = vperm.xlu2 %1922, %v748_v38  }
  0x32   : > { %1823 = vmatmul.msk.f32.vlgmr.msrb.gmra.mxu0 %vm581_vm1, %v560_v47  ;;  %1824 = vmatmul.msk.f32.vlgmr.msrb.gmra.mxu1 %vm581_vm1, %v560_v47 }
  0x33   : > { %1825 = vmatmul.msk.f32.vlgmr.msrb.gmra.mxu2 %vm581_vm1, %v560_v47  ;;  %1826 = vmatmul.msk.f32.vlgmr.msrb.gmra.mxu3 %vm581_vm1, %v560_v47 }
  0x36   : > { %761 = vperm.xlu1 %1921, %v747_v1  }
  0x80   : > { %v394_v60 = vpop.permute.xlu0 %393 }
  0x95   : > { %v417_v53 = vpop.f32.mrf.mxu0  ;;  %v437_v54 = vpop.f32.mrf.mxu1 }
  0x96   : > { %v418_v63 = vadd.f32 %v417_v53, %v394_v60  ;;  %v438_v0 = vadd.f32 %v437_v54, %v394_v60 }
  0x9c   : > { %v457_v55 = vpop.f32.mrf.mxu2  ;;  %v477_v56 = vpop.f32.mrf.mxu3 }
  0x9d   : > { %v458_v9 = vadd.f32 %v457_v55, %v394_v60  ;;  %v478_v18 = vadd.f32 %v477_v56, %v394_v60 }
  0x9f   : > { %v497_v58 = vpop.f32.mrf.mxu0  ;;  %v517_v59 = vpop.f32.mrf.mxu1 }
  0xa0   : > { %v498_v19 = vadd.f32 %v497_v58, %v394_v60  ;;  %v518_v20 = vadd.f32 %v517_v59, %v394_v60  ;;  %v2358_v39 = vpop.permute.xlu0 %751  ;;  %v2362_v46 = vpop.permute.xlu1 %756 }
  0xa6   : > { %v537_v61 = vpop.f32.mrf.mxu2  ;;  %v557_v62 = vpop.f32.mrf.mxu3 }
  0xa7   : > { %v602_v2 = vpop.f32.mrf.mxu0  ;;  %v622_v3 = vpop.f32.mrf.mxu1  ;;  %v538_v30 = vadd.f32 %v537_v61, %v394_v60  ;;  %v558_v31 = vadd.f32 %v557_v62, %v394_v60 }
  0xa8   : > { %v603_v4 = vadd.f32 %v602_v2, %v418_v63  ;;  %v623_v5 = vadd.f32 %v622_v3, %v438_v0  ;;  %v2368_v62 = vpop.permute.xlu1 %761 }
  0xaa   : > { %797 = vmatpush.msra.mxu0 %v603_v4  ;;  %826 = vmatpush.msra.mxu1 %v623_v5 }
  0xab   : > { %1827 = vmatmul.msk.f32.vlgmr.msra.gmra.mxu0 %vm769_vm2, %v577_v8  ;;  %1831 = vmatmul.msk.f32.vlgmr.msra.gmra.mxu1 %vm769_vm2, %v577_v8 }
  0xae   : > { %v642_v21 = vpop.f32.mrf.mxu2  ;;  %v662_v22 = vpop.f32.mrf.mxu3 }
  0xaf   : > { %v643_v23 = vadd.f32 %v642_v21, %v458_v9  ;;  %v663_v24 = vadd.f32 %v662_v22, %v478_v18  ;;  %v682_v25 = vpop.f32.mrf.mxu0  ;;  %v702_v26 = vpop.f32.mrf.mxu1 }
  0xb0   : > { %v683_v27 = vadd.f32 %v682_v25, %v498_v19  ;;  %v703_v28 = vadd.f32 %v702_v26, %v518_v20 }
  0xb1   : > { %855 = vmatpush.msra.mxu2 %v643_v23  ;;  %884 = vmatpush.msra.mxu3 %v663_v24 }
  0xb2   : > { %1835 = vmatmul.msk.f32.vlgmr.msra.gmra.mxu2 %vm769_vm2, %v577_v8  ;;  %1839 = vmatmul.msk.f32.vlgmr.msra.gmra.mxu3 %vm769_vm2, %v577_v8 }
  0xb3   : > { %913 = vmatpush.msrb.mxu0 %v683_v27  ;;  %942 = vmatpush.msrb.mxu1 %v703_v28 }
  0xb4   : > { %1828 = vmatmul.msk.f32.gmra.mxu0 %vm769_vm2, %v578_v29  ;;  %1832 = vmatmul.msk.f32.gmra.mxu1 %vm769_vm2, %v578_v29 }
  0xb6   : > { %v722_v32 = vpop.f32.mrf.mxu2  ;;  %v742_v33 = vpop.f32.mrf.mxu3 }
  0xb7   : > { %v723_v34 = vadd.f32 %v722_v32, %v538_v30  ;;  %v743_v35 = vadd.f32 %v742_v33, %v558_v31 }
  0xb9   : > { %971 = vmatpush.msrb.mxu2 %v723_v34  ;;  %1000 = vmatpush.msrb.mxu3 %v743_v35 }
  0xba   : > { %1836 = vmatmul.msk.f32.gmra.mxu2 %vm769_vm2, %v578_v29  ;;  %1840 = vmatmul.msk.f32.gmra.mxu3 %vm769_vm2, %v578_v29 }
  0xbc   : > { %1829 = vmatmul.msk.f32.gmra.mxu0 %vm769_vm2, %v579_v36  ;;  %1833 = vmatmul.msk.f32.gmra.mxu1 %vm769_vm2, %v579_v36 }
  0xc2   : > { %1837 = vmatmul.msk.f32.gmra.mxu2 %vm769_vm2, %v579_v36  ;;  %1841 = vmatmul.msk.f32.gmra.mxu3 %vm769_vm2, %v579_v36 }
  0xc4   : > { %1830 = vmatmul.msk.f32.gmra.mxu0 %vm769_vm2, %v580_v37  ;;  %1834 = vmatmul.msk.f32.gmra.mxu1 %vm769_vm2, %v580_v37 }
  0xca   : > { %1838 = vmatmul.msk.f32.gmra.mxu2 %vm769_vm2, %v580_v37  ;;  %1842 = vmatmul.msk.f32.gmra.mxu3 %vm769_vm2, %v580_v37 }
  0xcc   : > { %1843 = vmatmul.msk.f32.vlgmr.msrb.gmra.mxu0 %vm769_vm2, %v577_v8  ;;  %1847 = vmatmul.msk.f32.vlgmr.msrb.gmra.mxu1 %vm769_vm2, %v577_v8 }
  0xd2   : > { %1851 = vmatmul.msk.f32.vlgmr.msrb.gmra.mxu2 %vm769_vm2, %v577_v8  ;;  %1855 = vmatmul.msk.f32.vlgmr.msrb.gmra.mxu3 %vm769_vm2, %v577_v8 }
  0xd4   : > { %1844 = vmatmul.msk.f32.gmra.mxu0 %vm769_vm2, %v578_v29  ;;  %1848 = vmatmul.msk.f32.gmra.mxu1 %vm769_vm2, %v578_v29 }
  0xda   : > { %1852 = vmatmul.msk.f32.gmra.mxu2 %vm769_vm2, %v578_v29  ;;  %1856 = vmatmul.msk.f32.gmra.mxu3 %vm769_vm2, %v578_v29 }
  0xdc   : > { %1845 = vmatmul.msk.f32.gmra.mxu0 %vm769_vm2, %v579_v36  ;;  %1849 = vmatmul.msk.f32.gmra.mxu1 %vm769_vm2, %v579_v36 }
  0xe2   : > { %1853 = vmatmul.msk.f32.gmra.mxu2 %vm769_vm2, %v579_v36  ;;  %1857 = vmatmul.msk.f32.gmra.mxu3 %vm769_vm2, %v579_v36 }
  0xe4   : > { %1846 = vmatmul.msk.f32.gmra.mxu0 %vm769_vm2, %v580_v37  ;;  %1850 = vmatmul.msk.f32.gmra.mxu1 %vm769_vm2, %v580_v37 }
  0xea   : > { %1854 = vmatmul.msk.f32.gmra.mxu2 %vm769_vm2, %v580_v37  ;;  %1858 = vmatmul.msk.f32.gmra.mxu3 %vm769_vm2, %v580_v37 }
 0x128   : > { %v799_v40 = vpop.f32.mrf.mxu0  ;;  %v828_v41 = vpop.f32.mrf.mxu1 }
 0x129   : > { %v800_v42 = vadd.f32 %v799_v40, %v2358_v39  ;;  %v829_v43 = vadd.f32 %v828_v41, %v2358_v39 }
 0x12b   : > { %v1859_v44 = vmul.f32 -1.442695, %v800_v42  ;;  %v1860_v45 = vmul.f32 -1.442695, %v829_v43 }
 0x12d   : > { %1923 = vpow2.f32 %v1859_v44 }
 0x12e   : > { %1925 = vpow2.f32 %v1860_v45 }
 0x131   : > { %v802_v47 = vpop.f32.mrf.mxu0  ;;  %v831_v48 = vpop.f32.mrf.mxu1 }
 0x132   : > { %v803_v49 = vadd.f32 %v802_v47, %v2362_v46  ;;  %v832_v50 = vadd.f32 %v831_v48, %v2362_v46 }
 0x133   : > { %v1924_v51 = vpop.eup %1923 }
 0x134   : > { %v1926_v52 = vpop.eup %1925  ;;  %v1110_v53 = vadd.f32 1.0, %v1924_v51  ;;  %v1867_v57 = vmul.f32 -1.442695, %v803_v49  ;;  %v1868_v58 = vmul.f32 -1.442695, %v832_v50 }
 0x135   : > { %v1111_v54 = vadd.f32 1.0, %v1926_v52  ;;  %v857_v55 = vpop.f32.mrf.mxu2  ;;  %v886_v56 = vpop.f32.mrf.mxu3 }
 0x136   : > { %1927 = vrcp.f32 %v1110_v53  ;;  %v858_v59 = vadd.f32 %v857_v55, %v2358_v39  ;;  %v887_v60 = vadd.f32 %v886_v56, %v2358_v39  ;;  %v1151_v1 = vand.u32 2147483647, %v1110_v53 }
 0x137   : > { %1929 = vrcp.f32 %v1111_v54  ;;  %v1153_v2 = vand.u32 2147483648, %v1110_v53  ;;  %v1166_v9 = vand.u32 2147483647, %v1111_v54  ;;  %vm1147_vm3 = vweird.f32 %v1110_v53 }
 0x138   : > { %1931 = vpow2.f32 %v1867_v57  ;;  %v1861_v63 = vmul.f32 -1.442695, %v858_v59  ;;  %v1862_v0 = vmul.f32 -1.442695, %v887_v60  ;;  %vm1162_vm4 = vweird.f32 %v1111_v54 }
 0x139   : > { %v805_v61 = vpop.f32.mrf.mxu0  ;;  %1933 = vpow2.f32 %v1868_v58  ;;  %v834_v18 = vpop.f32.mrf.mxu1  ;;  %vm2371_vm5 = vcmp.eq.f32.partialorder %v1151_v1, 8.507059e+37  ;;  %v1154_v23 = vor.u32 1.1754944e-38, %v1153_v2  ;;  %v1168_v24 = vand.u32 2147483648, %v1111_v54 }
 0x13a   : > { %1935 = vpow2.f32 %v1861_v63  ;;  %v806_v4 = vadd.f32 %v805_v61, %v2368_v62  ;;  %v835_v30 = vadd.f32 %v834_v18, %v2368_v62  ;;  %vm2378_vm7 = vcmp.eq.f32.partialorder %v1166_v9, 8.507059e+37 }
 0x13b   : > { %1937 = vpow2.f32 %v1862_v0  ;;  %v1169_v48 = vor.u32 1.1754944e-38, %v1168_v24 }
 0x13c   : > { %v1928_v3 = vpop.eup %1927  ;;  %v1875_v31 = vmul.f32 -1.442695, %v806_v4  ;;  %v1876_v45 = vmul.f32 -1.442695, %v835_v30 }
 0x13d   : > { %v1930_v5 = vpop.eup %1929  ;;  %v1143_v8 = vmul.f32 %v1928_v3, %v1110_v53  ;;  %v860_v25 = vpop.f32.mrf.mxu2  ;;  %vm1148_vm6 = vweird.f32 %v1928_v3 }
 0x13e   : > { %v1158_v19 = vmul.f32 %v1930_v5, %v1111_v54  ;;  %v1932_v20 = vpop.eup %1931  ;;  %v889_v29 = vpop.f32.mrf.mxu3  ;;  %vm1163_vm8 = vweird.f32 %v1930_v5  ;;  %v861_v37 = vadd.f32 %v860_v25, %v2362_v46  ;;  %vm1149_vm9 = vmor %vm1147_vm3, %vm1148_vm6 }
 0x13f   : > { %v1144_v21 = vsub.f32 1.0, %v1143_v8  ;;  %v1934_v26 = vpop.eup %1933  ;;  %v2375_v28 = vadd.f32 1.0, %v1932_v20  ;;  %v890_v42 = vadd.f32 %v889_v29, %v2362_v46  ;;  %vm1164_vm10 = vmor %vm1162_vm4, %vm1163_vm8 }
 0x140   : > { %v1159_v27 = vsub.f32 1.0, %v1158_v19  ;;  %v2382_v34 = vadd.f32 1.0, %v1934_v26  ;;  %v1936_v35 = vpop.eup %1935  ;;  %v1869_v55 = vmul.f32 -1.442695, %v861_v37 }
 0x141   : > { %v1145_v32 = vmul.f32 %v1928_v3, %v1144_v21  ;;  %1939 = vrcp.f32 %v2375_v28  ;;  %v1938_v38 = vpop.eup %1937  ;;  %v2386_v41 = vadd.f32 1.0, %v1936_v35  ;;  %v1271_v49 = vand.u32 2147483647, %v2375_v28 }
 0x142   : > { %v1160_v36 = vmul.f32 %v1930_v5, %v1159_v27  ;;  %1941 = vrcp.f32 %v2382_v34  ;;  %v2391_v44 = vadd.f32 1.0, %v1938_v38  ;;  %v1870_v56 = vmul.f32 -1.442695, %v890_v42 }
 0x143   : > { %v1146_v40 = vadd.f32 %v1928_v3, %v1145_v32  ;;  %1943 = vpow2.f32 %v1875_v31  ;;  %v1183_v52 = vand.u32 2147483648, %v2386_v41  ;;  %v1181_v59 = vand.u32 2147483647, %v2386_v41 }
 0x144   : > { %v1161_v43 = vadd.f32 %v1930_v5, %v1160_v36  ;;  %1945 = vrcp.f32 %v2386_v41  ;;  %vm1267_vm11 = vweird.f32 %v2375_v28  ;;  %vm2415_vm12 = vcmp.eq.f32.partialorder %v1271_v49, 8.507059e+37 }
 0x145   : > { %v1150_v47 = vsel %vm1149_vm9, %v1928_v3, %v1146_v40  ;;  %1947 = vrcp.f32 %v2391_v44  ;;  %v1273_v63 = vand.u32 2147483648, %v2375_v28  ;;  %vm1282_vm13 = vweird.f32 %v2382_v34 }
 0x146   : > { %v1155_v50 = vsel %vm2371_vm5, %v1154_v23, %v1150_v47  ;;  %v1165_v51 = vsel %vm1164_vm10, %v1930_v5, %v1161_v43  ;;  %1949 = vpow2.f32 %v1876_v45  ;;  %vm1177_vm14 = vweird.f32 %v2386_v41 }
 0x147   : > { %v1622_v53 = vmul.f32 %v1155_v50, %v2196_v14  ;;  %v1170_v54 = vsel %vm2378_vm7, %v1169_v48, %v1165_v51  ;;  %v1940_v57 = vpop.eup %1939  ;;  %v1196_v1 = vand.u32 2147483647, %v2391_v44  ;;  %vm1192_vm0 = vweird.f32 %v2391_v44  ;;  %v808_v51 = vpop.f32.mrf.mxu0 }
 0x148   : > { %v1623_v58 = vmul.f32 %v1170_v54, %v2199_v15  ;;  %v1942_v60 = vpop.eup %1941  ;;  %v1263_v61 = vmul.f32 %v1940_v57, %v2375_v28  ;;  %v1184_v15 = vor.u32 1.1754944e-38, %v1183_v52  ;;  %vm1268_vm15 = vweird.f32 %v1940_v57  ;;  %v2467_v52 = vpop.f32.mrf.mxu1 }
 0x149   : > { %1654 = vst [vmem:[%s2401_s16] sm:$0xff] %v1622_v53  ;;  %v1944_v0 = vpop.eup %1943  ;;  %v1278_v2 = vmul.f32 %v1942_v60, %v2382_v34  ;;  %v1286_v5 = vand.u32 2147483647, %v2382_v34  ;;  %v1288_v8 = vand.u32 2147483648, %v2382_v34  ;;  %1951 = vpow2.f32 %v1869_v55  ;;  %vm2442_vm4 = vmor %vm1267_vm11, %vm1268_vm15 }
 0x14a   : > { %1655 = vst [vmem:[%s2401_s16 + $0x8] sm:$0xff] %v1623_v58  ;;  %v1946_v3 = vpop.eup %1945  ;;  %v1264_v4 = vsub.f32 1.0, %v1263_v61  ;;  %vm2429_vm1 = vcmp.eq.f32.partialorder %v1181_v59, 8.507059e+37  ;;  %vm1283_vm2 = vweird.f32 %v1942_v60  ;;  %1953 = vpow2.f32 %v1870_v56  ;;  %v863_v59 = vpop.f32.mrf.mxu2 }
 0x14b   : > { %v1948_v9 = vpop.eup %1947  ;;  %v1173_v18 = vmul.f32 %v1946_v3, %v2386_v41  ;;  %v1279_v20 = vsub.f32 1.0, %v1278_v2  ;;  %v1198_v22 = vand.u32 2147483648, %v2391_v44  ;;  %v1274_v24 = vor.u32 1.1754944e-38, %v1273_v63  ;;  %vm2450_vm5 = vmor %vm1282_vm13, %vm1283_vm2 }
 0x14c   : > { %v1188_v21 = vmul.f32 %v1948_v9, %v2391_v44  ;;  %v1265_v23 = vmul.f32 %v1940_v57, %v1264_v4  ;;  %v1950_v25 = vpop.eup %1949  ;;  %vm2435_vm3 = vcmp.eq.f32.partialorder %v1196_v1, 8.507059e+37  ;;  %v2446_v31 = vadd.f32 1.0, %v1944_v0 }
 0x14d   : > { %v1174_v26 = vsub.f32 1.0, %v1173_v18  ;;  %v1280_v30 = vmul.f32 %v1942_v60, %v1279_v20  ;;  %vm2454_vm6 = vcmp.eq.f32.partialorder %v1286_v5, 8.507059e+37  ;;  %v1289_v28 = vor.u32 1.1754944e-38, %v1288_v8  ;;  %v2517_v18 = vpop.permute.xlu2 %766 }
 0x14e   : > { %v1189_v32 = vsub.f32 1.0, %v1188_v21  ;;  %v1266_v33 = vadd.f32 %v1940_v57, %v1265_v23  ;;  %vm1178_vm7 = vweird.f32 %v1946_v3  ;;  %1955 = vrcp.f32 %v2446_v31 }
 0x14f   : > { %v1175_v37 = vmul.f32 %v1946_v3, %v1174_v26  ;;  %v1281_v38 = vadd.f32 %v1942_v60, %v1280_v30  ;;  %v1952_v40 = vpop.eup %1951  ;;  %vm1193_vm8 = vweird.f32 %v1948_v9  ;;  %v1199_v43 = vor.u32 1.1754944e-38, %v1198_v22  ;;  %vm1179_vm9 = vmor %vm1177_vm14, %vm1178_vm7  ;;  %v915_v35 = vpop.f32.mrf.mxu0 }
 0x150   : > { %v1190_v42 = vmul.f32 %v1948_v9, %v1189_v32  ;;  %v1270_v34 = vsel %vm2442_vm4, %v1940_v57, %v1266_v33  ;;  %v1954_v45 = vpop.eup %1953  ;;  %v2465_v50 = vadd.f32 1.0, %v1952_v40  ;;  %vm1194_vm10 = vmor %vm1192_vm0, %vm1193_vm8  ;;  %v2482_v41 = vadd.f32 1.0, %v1950_v25  ;;  %v944_v36 = vpop.f32.mrf.mxu1  ;;  %v2053_v40 = vld [vmem:[%s2167_s10 + $0xc0] sm:$0xff] }
 0x151   : > { %v1176_v47 = vadd.f32 %v1946_v3, %v1175_v37  ;;  %v1275_v48 = vsel %vm2415_vm12, %v1274_v24, %v1270_v34  ;;  %v1285_v49 = vsel %vm2450_vm5, %v1942_v60, %v1281_v38  ;;  %v2475_v56 = vadd.f32 1.0, %v1954_v45  ;;  %v892_v60 = vpop.f32.mrf.mxu3 }
 0x152   : > { %v1191_v53 = vadd.f32 %v1948_v9, %v1190_v42  ;;  %v1290_v54 = vsel %vm2454_vm6, %v1289_v28, %v1285_v49  ;;  %v1630_v55 = vmul.f32 %v1275_v48, %v2182_v10  ;;  %1957 = vrcp.f32 %v2465_v50 }
 0x153   : > { %v1180_v57 = vsel %vm1179_vm9, %v1946_v3, %v1176_v47  ;;  %v1631_v58 = vmul.f32 %v1290_v54, %v2187_v11  ;;  %v1303_v14 = vand.u32 2147483648, %v2465_v50  ;;  %v1391_v63 = vand.u32 2147483647, %v2446_v31 }
 0x154   : > { %v1185_v10 = vsel %vm2429_vm1, %v1184_v15, %v1180_v57  ;;  %v1195_v61 = vsel %vm1194_vm10, %v1948_v9, %v1191_v53  ;;  %1662 = vst [vmem:[%s2401_s16 + $0x40] sm:$0xff] %v1630_v55  ;;  %v2489_v44 = vpop.eup %1955  ;;  %1959 = vrcp.f32 %v2475_v56  ;;  %v1393_v1 = vand.u32 2147483648, %v2446_v31 }
 0x155   : > { %v1624_v11 = vmul.f32 %v1185_v10, %v2204_v16  ;;  %v1200_v0 = vsel %vm2435_vm3, %v1199_v43, %v1195_v61  ;;  %1663 = vst [vmem:[%s2401_s16 + $0x48] sm:$0xff] %v1631_v58  ;;  %v1301_v2 = vand.u32 2147483647, %v2465_v50  ;;  %v864_v3 = vadd.f32 %v863_v59, %v2368_v62 }
 0x156   : > { %v1625_v15 = vmul.f32 %v1200_v0, %v2207_v17  ;;  %v893_v4 = vadd.f32 %v892_v60, %v2368_v62  ;;  %v2502_v5 = vor.u32 1.1754944e-38, %v1303_v14  ;;  %v1318_v16 = vand.u32 2147483648, %v2475_v56 }
 0x157   : > { %1656 = vst [vmem:[%s2401_s16 + $0x10] sm:$0xff] %v1624_v11  ;;  %v1383_v8 = vmul.f32 %v2489_v44, %v2446_v31  ;;  %vm1387_vm11 = vweird.f32 %v2446_v31  ;;  %vm1297_vm12 = vweird.f32 %v2465_v50  ;;  %v1316_v17 = vand.u32 2147483647, %v2475_v56 }
 0x158   : > { %1657 = vst [vmem:[%s2401_s16 + $0x18] sm:$0xff] %v1625_v15  ;;  %vm1388_vm13 = vweird.f32 %v2489_v44  ;;  %vm2512_vm14 = vcmp.eq.f32.partialorder %v1391_v63, 8.507059e+37  ;;  %1961 = vrcp.f32 %v2482_v41  ;;  %v1958_v19 = vpop.eup %1957  ;;  %v2519_v20 = vor.u32 1.1754944e-38, %v1318_v16 }
 0x159   : > { %v1384_v21 = vsub.f32 1.0, %v1383_v8  ;;  %v1394_v22 = vor.u32 1.1754944e-38, %v1393_v1  ;;  %vm1402_vm15 = vweird.f32 %v2482_v41  ;;  %v1293_v23 = vmul.f32 %v1958_v19, %v2465_v50  ;;  %vm2541_vm5 = vmor %vm1387_vm11, %vm1388_vm13  ;;  %v895_v8 = vpop.f32.mrf.mxu3 }
 0x15a   : > { %vm2523_vm0 = vcmp.eq.f32.partialorder %v1301_v2, 8.507059e+37  ;;  %vm1312_vm1 = vweird.f32 %v2475_v56  ;;  %v1406_v25 = vand.u32 2147483647, %v2482_v41  ;;  %v1877_v26 = vmul.f32 -1.442695, %v864_v3  ;;  %v1960_v29 = vpop.eup %1959 }
 0x15b   : > { %v1878_v27 = vmul.f32 -1.442695, %v893_v4  ;;  %vm1298_vm2 = vweird.f32 %v1958_v19  ;;  %v1385_v30 = vmul.f32 %v2489_v44, %v1384_v21  ;;  %v1408_v32 = vand.u32 2147483648, %v2482_v41 }
 0x15c   : > { %v809_v33 = vadd.f32 %v808_v51, %v2517_v18  ;;  %v1294_v28 = vsub.f32 1.0, %v1293_v23  ;;  %v1308_v37 = vmul.f32 %v1960_v29, %v2475_v56  ;;  %vm1313_vm3 = vweird.f32 %v1960_v29  ;;  %vm1299_vm7 = vmor %vm1297_vm12, %vm1298_vm2  ;;  %v866_v56 = vpop.f32.mrf.mxu2 }
 0x15d   : > { %vm2533_vm4 = vcmp.eq.f32.partialorder %v1316_v17, 8.507059e+37  ;;  %1963 = vpow2.f32 %v1877_v26  ;;  %v1386_v42 = vadd.f32 %v2489_v44, %v1385_v30  ;;  %v838_v43 = vadd.f32 %v2467_v52, %v2517_v18  ;;  %vm1314_vm8 = vmor %vm1312_vm1, %vm1313_vm3 }
 0x15e   : > { %1965 = vpow2.f32 %v1878_v27  ;;  %v1883_v34 = vmul.f32 -1.442695, %v809_v33  ;;  %v1962_v45 = vpop.eup %1961  ;;  %v1295_v47 = vmul.f32 %v1958_v19, %v1294_v28  ;;  %v1309_v48 = vsub.f32 1.0, %v1308_v37 }
 0x15f   : > { %v916_v49 = vadd.f32 %v915_v35, %v2358_v39  ;;  %v945_v51 = vadd.f32 %v944_v36, %v2358_v39  ;;  %v1390_v31 = vsel %vm2541_vm5, %v2489_v44, %v1386_v42  ;;  %v1398_v53 = vmul.f32 %v1962_v45, %v2482_v41 }
 0x160   : > { %vm1403_vm6 = vweird.f32 %v1962_v45  ;;  %1967 = vpow2.f32 %v1883_v34  ;;  %v1296_v54 = vadd.f32 %v1958_v19, %v1295_v47  ;;  %v1310_v55 = vmul.f32 %v1960_v29, %v1309_v48 }
 0x161   : > { %v1395_v52 = vsel %vm2512_vm14, %v1394_v22, %v1390_v31  ;;  %v1884_v57 = vmul.f32 -1.442695, %v838_v43  ;;  %v1399_v58 = vsub.f32 1.0, %v1398_v53  ;;  %v1863_v60 = vmul.f32 -1.442695, %v916_v49  ;;  %vm2573_vm9 = vmor %vm1402_vm15, %vm1403_vm6 }
 0x162   : > { %v1638_v59 = vmul.f32 %v1395_v52, %v2174_v6  ;;  %v1864_v10 = vmul.f32 -1.442695, %v945_v51  ;;  %v1300_v14 = vsel %vm1299_vm7, %v1958_v19, %v1296_v54  ;;  %v1311_v63 = vadd.f32 %v1960_v29, %v1310_v55 }
 0x163   : > { %v1964_v61 = vpop.eup %1963  ;;  %v1409_v44 = vor.u32 1.1754944e-38, %v1408_v32  ;;  %1969 = vpow2.f32 %v1884_v57  ;;  %v1305_v0 = vsel %vm2523_vm0, %v2502_v5, %v1300_v14  ;;  %v1400_v50 = vmul.f32 %v1962_v45, %v1399_v58 }
 0x164   : > { %v1966_v11 = vpop.eup %1965  ;;  %1670 = vst [vmem:[%s2401_s16 + $0x80] sm:$0xff] %v1638_v59  ;;  %v2567_v6 = vadd.f32 1.0, %v1964_v61  ;;  %1971 = vpow2.f32 %v1863_v60  ;;  %v1632_v1 = vmul.f32 %v1305_v0, %v2190_v12  ;;  %v1315_v15 = vsel %vm1314_vm8, %v1960_v29, %v1311_v63  ;;  %v1002_v61 = vpop.f32.mrf.mxu3 }
 0x165   : > { %v2577_v3 = vadd.f32 1.0, %v1966_v11  ;;  %1973 = vpow2.f32 %v1864_v10  ;;  %v1320_v5 = vsel %vm2533_vm4, %v2519_v20, %v1315_v15  ;;  %v1401_v16 = vadd.f32 %v1962_v45, %v1400_v50 }
 0x166   : > { %v1968_v4 = vpop.eup %1967  ;;  %vm1407_vm10 = vcmp.eq.f32.partialorder %v1406_v25, 8.507059e+37  ;;  %1975 = vrcp.f32 %v2567_v6  ;;  %1664 = vst [vmem:[%s2401_s16 + $0x50] sm:$0xff] %v1632_v1  ;;  %v1633_v12 = vmul.f32 %v1320_v5, %v2193_v13  ;;  %v1421_v19 = vand.u32 2147483647, %v2567_v6 }
 0x167   : > { %1977 = vrcp.f32 %v2577_v3  ;;  %v1405_v41 = vsel %vm2573_vm9, %v1962_v45, %v1401_v16  ;;  %v1423_v20 = vand.u32 2147483648, %v2567_v6  ;;  %v2591_v21 = vadd.f32 1.0, %v1968_v4  ;;  %v973_v45 = vpop.f32.mrf.mxu2  ;;  %v2051_v16 = vld [vmem:[%s2167_s10 + $0x90] sm:$0xff] }
 0x168   : > { %1665 = vst [vmem:[%s2401_s16 + $0x58] sm:$0xff] %v1633_v12  ;;  %v1410_v9 = vsel %vm1407_vm10, %v1409_v44, %v1405_v41  ;;  %v1436_v13 = vand.u32 2147483647, %v2577_v3  ;;  %v1438_v24 = vand.u32 2147483648, %v2577_v3  ;;  %vm1417_vm11 = vweird.f32 %v2567_v6 }
 0x169   : > { %v1970_v17 = vpop.eup %1969  ;;  %v1639_v23 = vmul.f32 %v1410_v9, %v2177_v7  ;;  %1979 = vrcp.f32 %v2591_v21  ;;  %v867_v27 = vadd.f32 %v866_v56, %v2517_v18  ;;  %vm1432_vm12 = vweird.f32 %v2577_v3 }
 0x16a   : > { %v1972_v22 = vpop.eup %1971  ;;  %v2596_v25 = vadd.f32 1.0, %v1970_v17  ;;  %v1511_v30 = vand.u32 2147483647, %v2591_v21  ;;  %v1513_v7 = vand.u32 2147483648, %v2591_v21  ;;  %vm2607_vm13 = vcmp.eq.f32.partialorder %v1421_v19, 8.507059e+37  ;;  %v2052_v17 = vld [vmem:[%s2167_s10 + $0x98] sm:$0xff] }
 0x16b   : > { %v1974_v26 = vpop.eup %1973  ;;  %1671 = vst [vmem:[%s2401_s16 + $0x88] sm:$0xff] %v1639_v23  ;;  %v1424_v36 = vor.u32 1.1754944e-38, %v1423_v20  ;;  %vm2614_vm14 = vcmp.eq.f32.partialorder %v1436_v13, 8.507059e+37  ;;  %v1439_v42 = vor.u32 1.1754944e-38, %v1438_v24  ;;  %vm1507_vm15 = vweird.f32 %v2591_v21 }
 0x16c   : > { %v1976_v29 = vpop.eup %1975  ;;  %1981 = vrcp.f32 %v2596_v25  ;;  %v1526_v28 = vand.u32 2147483647, %v2596_v25  ;;  %v1528_v37 = vand.u32 2147483648, %v2596_v25  ;;  %vm1522_vm1 = vweird.f32 %v2596_v25 }
 0x16d   : > { %v1978_v32 = vpop.eup %1977  ;;  %v1413_v33 = vmul.f32 %v1976_v29, %v2567_v6  ;;  %vm1418_vm0 = vweird.f32 %v1976_v29  ;;  %v2620_v34 = vadd.f32 1.0, %v1972_v22  ;;  %vm2622_vm3 = vcmp.eq.f32.partialorder %v1511_v30, 8.507059e+37 }
 0x16e   : > { %v1428_v38 = vmul.f32 %v1978_v32, %v2577_v3  ;;  %vm1433_vm2 = vweird.f32 %v1978_v32  ;;  %v1514_v49 = vor.u32 1.1754944e-38, %v1513_v7  ;;  %v2626_v51 = vadd.f32 1.0, %v1974_v26  ;;  %vm1419_vm5 = vmor %vm1417_vm11, %vm1418_vm0 }
 0x16f   : > { %v1414_v43 = vsub.f32 1.0, %v1413_v33  ;;  %v1980_v31 = vpop.eup %1979  ;;  %vm2628_vm4 = vcmp.eq.f32.partialorder %v1526_v28, 8.507059e+37  ;;  %v1529_v55 = vor.u32 1.1754944e-38, %v1528_v37  ;;  %1983 = vrcp.f32 %v2620_v34  ;;  %vm1434_vm7 = vmor %vm1432_vm12, %vm1433_vm2  ;;  %v947_v28 = vpop.f32.mrf.mxu1 }
 0x170   : > { %v1429_v47 = vsub.f32 1.0, %v1428_v38  ;;  %v1885_v52 = vmul.f32 -1.442695, %v867_v27  ;;  %v1503_v59 = vmul.f32 %v1980_v31, %v2591_v21  ;;  %v896_v60 = vadd.f32 %v895_v8, %v2517_v18  ;;  %v976_v37 = vpop.f32.mrf.mxu2 }
 0x171   : > { %v1415_v53 = vmul.f32 %v1976_v29, %v1414_v43  ;;  %v974_v10 = vadd.f32 %v973_v45, %v2358_v39  ;;  %v1211_v44 = vand.u32 2147483647, %v2620_v34  ;;  %v1213_v11 = vand.u32 2147483648, %v2620_v34  ;;  %v1005_v45 = vpop.f32.mrf.mxu3 }
 0x172   : > { %v1982_v57 = vpop.eup %1981  ;;  %v1430_v58 = vmul.f32 %v1978_v32, %v1429_v47  ;;  %v1504_v50 = vsub.f32 1.0, %v1503_v59  ;;  %vm1508_vm6 = vweird.f32 %v1980_v31  ;;  %1985 = vrcp.f32 %v2626_v51  ;;  %v2054_v47 = vld [vmem:[%s2167_s10 + $0xc8] sm:$0xff] }
 0x173   : > { %v1416_v14 = vadd.f32 %v1976_v29, %v1415_v53  ;;  %v1518_v63 = vmul.f32 %v1982_v57, %v2596_v25  ;;  %vm1523_vm8 = vweird.f32 %v1982_v57  ;;  %v1003_v2 = vadd.f32 %v1002_v61, %v2358_v39  ;;  %vm2656_vm10 = vmor %vm1507_vm15, %vm1508_vm6 }
 0x174   : > { %v1431_v0 = vadd.f32 %v1978_v32, %v1430_v58  ;;  %v1505_v4 = vmul.f32 %v1980_v31, %v1504_v50  ;;  %vm1207_vm9 = vweird.f32 %v2620_v34  ;;  %v1214_v8 = vor.u32 1.1754944e-38, %v1213_v11  ;;  %vm2664_vm11 = vmor %vm1522_vm1, %vm1523_vm8  ;;  %v2055_v11 = vld [vmem:[%s2167_s10 + $0x20] sm:$0xff] }
 0x175   : > { %v1420_v1 = vsel %vm1419_vm5, %v1976_v29, %v1416_v14  ;;  %v1519_v15 = vsub.f32 1.0, %v1518_v63  ;;  %v1984_v5 = vpop.eup %1983  ;;  %vm2669_vm12 = vcmp.eq.f32.partialorder %v1211_v44, 8.507059e+37  ;;  %v1226_v23 = vand.u32 2147483647, %v2626_v51 }
 0x176   : > { %v1425_v6 = vsel %vm2607_vm13, %v1424_v36, %v1420_v1  ;;  %v1435_v56 = vsel %vm1434_vm7, %v1978_v32, %v1431_v0  ;;  %v1506_v19 = vadd.f32 %v1980_v31, %v1505_v4  ;;  %v1203_v22 = vmul.f32 %v1984_v5, %v2620_v34  ;;  %v918_v32 = vpop.f32.mrf.mxu0 }
 0x177   : > { %v1640_v12 = vmul.f32 %v2051_v16, %v1425_v6  ;;  %v1440_v3 = vsel %vm2614_vm14, %v1439_v42, %v1435_v56  ;;  %v1520_v39 = vmul.f32 %v1982_v57, %v1519_v15  ;;  %v1228_v24 = vand.u32 2147483648, %v2626_v51 }
 0x178   : > { %v1641_v9 = vmul.f32 %v2052_v17, %v1440_v3  ;;  %1987 = vpow2.f32 %v1885_v52  ;;  %v1886_v26 = vmul.f32 -1.442695, %v896_v60  ;;  %v1986_v25 = vpop.eup %1985  ;;  %v1510_v27 = vsel %vm2656_vm10, %v1980_v31, %v1506_v19 }
 0x179   : > { %1672 = vst [vmem:[%s2401_s16 + $0x90] sm:$0xff] %v1640_v12  ;;  %v1521_v13 = vadd.f32 %v1982_v57, %v1520_v39  ;;  %v1204_v29 = vsub.f32 1.0, %v1203_v22  ;;  %v1865_v30 = vmul.f32 -1.442695, %v974_v10  ;;  %v1866_v7 = vmul.f32 -1.442695, %v1003_v2 }
 0x17a   : > { %1673 = vst [vmem:[%s2401_s16 + $0x98] sm:$0xff] %v1641_v9  ;;  %v1515_v33 = vsel %vm2622_vm3, %v1514_v49, %v1510_v27  ;;  %vm1208_vm13 = vweird.f32 %v1984_v5  ;;  %v1218_v36 = vmul.f32 %v1986_v25, %v2626_v51  ;;  %1989 = vpow2.f32 %v1886_v26 }
 0x17b   : > { %v1525_v35 = vsel %vm2664_vm11, %v1982_v57, %v1521_v13  ;;  %v1646_v42 = vmul.f32 %v2053_v40, %v1515_v33  ;;  %v1205_v43 = vmul.f32 %v1984_v5, %v1204_v29  ;;  %1991 = vpow2.f32 %v1865_v30  ;;  %vm1209_vm14 = vmor %vm1207_vm9, %vm1208_vm13 }
 0x17c   : > { %v1530_v38 = vsel %vm2628_vm4, %v1529_v55, %v1525_v35  ;;  %v1219_v49 = vsub.f32 1.0, %v1218_v36  ;;  %v919_v31 = vadd.f32 %v918_v32, %v2362_v46  ;;  %1993 = vpow2.f32 %v1866_v7  ;;  %v2060_v36 = vld [vmem:[%s2167_s10 + $0x38] sm:$0xff] }
 0x17d   : > { %v1647_v48 = vmul.f32 %v2054_v47, %v1530_v38  ;;  %1678 = vst [vmem:[%s2401_s16 + $0xc0] sm:$0xff] %v1646_v42  ;;  %v1206_v53 = vadd.f32 %v1984_v5, %v1205_v43  ;;  %v948_v52 = vadd.f32 %v947_v28, %v2362_v46  ;;  %v977_v54 = vadd.f32 %v976_v37, %v2362_v46 }
 0x17e   : > { %v1988_v55 = vpop.eup %1987  ;;  %v1220_v57 = vmul.f32 %v1986_v25, %v1219_v49  ;;  %vm1223_vm15 = vweird.f32 %v1986_v25  ;;  %v1871_v58 = vmul.f32 -1.442695, %v919_v31  ;;  %v1006_v59 = vadd.f32 %v1005_v45, %v2362_v46  ;;  %v921_v4 = vpop.f32.mrf.mxu0 }
 0x17f   : > { %1679 = vst [vmem:[%s2401_s16 + $0xc8] sm:$0xff] %v1647_v48  ;;  %v1210_v60 = vsel %vm1209_vm14, %v1984_v5, %v1206_v53  ;;  %v2697_v10 = vadd.f32 1.0, %v1988_v55  ;;  %v1872_v61 = vmul.f32 -1.442695, %v948_v52  ;;  %v1873_v14 = vmul.f32 -1.442695, %v977_v54 }
 0x180   : > { %v1215_v63 = vsel %vm2669_vm12, %v1214_v8, %v1210_v60  ;;  %v1221_v44 = vadd.f32 %v1986_v25, %v1220_v57  ;;  %vm1222_vm0 = vweird.f32 %v2626_v51  ;;  %1995 = vpow2.f32 %v1871_v58  ;;  %v1990_v34 = vpop.eup %1989  ;;  %v2056_v5 = vld [vmem:[%s2167_s10 + $0x28] sm:$0xff] }
 0x181   : > { %v1626_v0 = vmul.f32 %v2055_v11, %v1215_v63  ;;  %vm1224_vm1 = vmor %vm1222_vm0, %vm1223_vm15  ;;  %vm1227_vm2 = vcmp.eq.f32.partialorder %v1226_v23, 8.507059e+37  ;;  %v1229_v46 = vor.u32 1.1754944e-38, %v1228_v24  ;;  %1997 = vrcp.f32 %v2697_v10  ;;  %v1992_v50 = vpop.eup %1991  ;;  %v2057_v11 = vld [vmem:[%s2167_s10 + $0xd0] sm:$0xff] }
 0x182   : > { %v1225_v1 = vsel %vm1224_vm1, %v1986_v25, %v1221_v44  ;;  %v2704_v15 = vadd.f32 1.0, %v1990_v34  ;;  %1999 = vpow2.f32 %v1872_v61  ;;  %v1874_v2 = vmul.f32 -1.442695, %v1006_v59  ;;  %v1994_v6 = vpop.eup %1993 }
 0x183   : > { %1658 = vst [vmem:[%s2401_s16 + $0x20] sm:$0xff] %v1626_v0  ;;  %v1230_v51 = vsel %vm1227_vm2, %v1229_v46, %v1225_v1  ;;  %v2707_v56 = vadd.f32 1.0, %v1992_v50  ;;  %2001 = vpow2.f32 %v1873_v14  ;;  %v1541_v12 = vand.u32 2147483647, %v2697_v10 }
 0x184   : > { %v1627_v16 = vmul.f32 %v2056_v5, %v1230_v51  ;;  %2003 = vrcp.f32 %v2704_v15  ;;  %v1543_v3 = vand.u32 2147483648, %v2697_v10  ;;  %v1558_v39 = vand.u32 2147483648, %v2704_v15 }
 0x185   : > { %2005 = vrcp.f32 %v2707_v56  ;;  %v2716_v8 = vadd.f32 1.0, %v1994_v6  ;;  %v922_v17 = vadd.f32 %v921_v4, %v2368_v62  ;;  %v1556_v19 = vand.u32 2147483647, %v2704_v15 }
 0x186   : > { %v1996_v41 = vpop.eup %1995  ;;  %1659 = vst [vmem:[%s2401_s16 + $0x28] sm:$0xff] %v1627_v16  ;;  %2007 = vpow2.f32 %v1874_v2  ;;  %v1243_v20 = vand.u32 2147483648, %v2707_v56  ;;  %vm1537_vm3 = vweird.f32 %v2697_v10  ;;  %vm2725_vm4 = vcmp.eq.f32.partialorder %v1541_v12, 8.507059e+37  ;;  %v2058_v12 = vld [vmem:[%s2167_s10 + $0xd8] sm:$0xff] }
 0x187   : > { %v1998_v9 = vpop.eup %1997  ;;  %v2721_v22 = vadd.f32 1.0, %v1996_v41  ;;  %v1241_v24 = vand.u32 2147483647, %v2707_v56  ;;  %v1544_v25 = vor.u32 1.1754944e-38, %v1543_v3  ;;  %vm1552_vm5 = vweird.f32 %v2704_v15 }
 0x188   : > { %v2000_v21 = vpop.eup %1999  ;;  %v1533_v23 = vmul.f32 %v1998_v9, %v2697_v10  ;;  %2009 = vrcp.f32 %v2716_v8  ;;  %v1258_v27 = vand.u32 2147483648, %v2716_v8  ;;  %v1559_v7 = vor.u32 1.1754944e-38, %v1558_v39 }
 0x189   : > { %v2002_v26 = vpop.eup %2001  ;;  %vm1237_vm6 = vweird.f32 %v2707_v56  ;;  %2011 = vrcp.f32 %v2721_v22  ;;  %v1879_v32 = vmul.f32 -1.442695, %v922_v17  ;;  %vm1538_vm7 = vweird.f32 %v1998_v9 }
 0x18a   : > { %v2004_v29 = vpop.eup %2003  ;;  %v1534_v30 = vsub.f32 1.0, %v1533_v23  ;;  %vm2736_vm8 = vcmp.eq.f32.partialorder %v1556_v19, 8.507059e+37  ;;  %v1244_v28 = vor.u32 1.1754944e-38, %v1243_v20  ;;  %v1256_v37 = vand.u32 2147483647, %v2716_v8  ;;  %vm1539_vm14 = vmor %vm1537_vm3, %vm1538_vm7 }
 0x18b   : > { %v2006_v33 = vpop.eup %2005  ;;  %v1548_v35 = vmul.f32 %v2004_v29, %v2704_v15  ;;  %vm2742_vm9 = vcmp.eq.f32.partialorder %v1241_v24, 8.507059e+37  ;;  %vm1327_vm10 = vweird.f32 %v2721_v22  ;;  %v1331_v45 = vand.u32 2147483647, %v2721_v22  ;;  %v950_v24 = vpop.f32.mrf.mxu1 }
 0x18c   : > { %v2008_v38 = vpop.eup %2007  ;;  %v1535_v40 = vmul.f32 %v1998_v9, %v1534_v30  ;;  %v1233_v42 = vmul.f32 %v2006_v33, %v2707_v56  ;;  %vm1553_vm11 = vweird.f32 %v2004_v29  ;;  %v2748_v48 = vor.u32 1.1754944e-38, %v1258_v27  ;;  %v979_v27 = vpop.f32.mrf.mxu2 }
 0x18d   : > { %v1549_v47 = vsub.f32 1.0, %v1548_v35  ;;  %v2750_v49 = vadd.f32 1.0, %v2000_v21  ;;  %vm1238_vm12 = vweird.f32 %v2006_v33  ;;  %vm1252_vm13 = vweird.f32 %v2716_v8  ;;  %vm1554_vm1 = vmor %vm1552_vm5, %vm1553_vm11  ;;  %v1008_v35 = vpop.f32.mrf.mxu3 }
 0x18e   : > { %v1536_v31 = vadd.f32 %v1998_v9, %v1535_v40  ;;  %v1234_v53 = vsub.f32 1.0, %v1233_v42  ;;  %v1333_v52 = vand.u32 2147483648, %v2721_v22  ;;  %v2010_v54 = vpop.eup %2009  ;;  %v2758_v57 = vadd.f32 1.0, %v2002_v26  ;;  %vm1239_vm2 = vmor %vm1237_vm6, %vm1238_vm12  ;;  %v2061_v42 = vld [vmem:[%s2167_s10 + $0x60] sm:$0xff] }
 0x18f   : > { %v1550_v55 = vmul.f32 %v2004_v29, %v1549_v47  ;;  %2013 = vrcp.f32 %v2750_v49  ;;  %v2760_v58 = vadd.f32 1.0, %v2008_v38  ;;  %v2012_v59 = vpop.eup %2011  ;;  %v1248_v14 = vmul.f32 %v2010_v54, %v2716_v8 }
 0x190   : > { %v1540_v60 = vsel %vm1539_vm14, %v1998_v9, %v1536_v31  ;;  %v1235_v61 = vmul.f32 %v2006_v33, %v1234_v53  ;;  %vm2763_vm15 = vcmp.eq.f32.partialorder %v1256_v37, 8.507059e+37  ;;  %2015 = vpow2.f32 %v1879_v32  ;;  %v2059_v9 = vld [vmem:[%s2167_s10 + $0x30] sm:$0xff] }
 0x191   : > { %v1545_v10 = vsel %vm2725_vm4, %v1544_v25, %v1540_v60  ;;  %v1551_v44 = vadd.f32 %v2004_v29, %v1550_v55  ;;  %v1323_v34 = vmul.f32 %v2012_v59, %v2721_v22  ;;  %vm1328_vm0 = vweird.f32 %v2012_v59 }
 0x192   : > { %v1648_v0 = vmul.f32 %v2057_v11, %v1545_v10  ;;  %v1236_v46 = vadd.f32 %v2006_v33, %v1235_v61  ;;  %v1249_v50 = vsub.f32 1.0, %v1248_v14  ;;  %v1346_v1 = vand.u32 2147483647, %v2750_v49  ;;  %vm2794_vm5 = vmor %vm1327_vm10, %vm1328_vm0 }
 0x193   : > { %v1555_v2 = vsel %vm1554_vm1, %v2004_v29, %v1551_v44  ;;  %v1324_v6 = vsub.f32 1.0, %v1323_v34  ;;  %v1348_v51 = vand.u32 2147483648, %v2750_v49  ;;  %2017 = vrcp.f32 %v2758_v57 }
 0x194   : > { %1680 = vst [vmem:[%s2401_s16 + $0xd0] sm:$0xff] %v1648_v0  ;;  %v1560_v15 = vsel %vm2736_vm8, %v1559_v7, %v1555_v2  ;;  %v1240_v4 = vsel %vm1239_vm2, %v2006_v33, %v1236_v46  ;;  %v1250_v5 = vmul.f32 %v2010_v54, %v1249_v50  ;;  %vm1253_vm3 = vweird.f32 %v2010_v54  ;;  %v2062_v0 = vld [vmem:[%s2167_s10 + $0x68] sm:$0xff] }
 0x195   : > { %v2014_v16 = vpop.eup %2013  ;;  %v1649_v3 = vmul.f32 %v2058_v12, %v1560_v15  ;;  %v1245_v56 = vsel %vm2742_vm9, %v1244_v28, %v1240_v4  ;;  %v1325_v41 = vmul.f32 %v2012_v59, %v1324_v6  ;;  %vm2786_vm4 = vcmp.eq.f32.partialorder %v1331_v45, 8.507059e+37  ;;  %vm1254_vm6 = vmor %vm1252_vm13, %vm1253_vm3  ;;  %v953_v6 = vpop.f32.mrf.mxu1 }
 0x196   : > { %v2016_v17 = vpop.eup %2015  ;;  %v1628_v19 = vmul.f32 %v2059_v9, %v1245_v56  ;;  %v1251_v20 = vadd.f32 %v2010_v54, %v1250_v5  ;;  %v1334_v23 = vor.u32 1.1754944e-38, %v1333_v52  ;;  %v1338_v13 = vmul.f32 %v2014_v16, %v2750_v49  ;;  %v982_v5 = vpop.f32.mrf.mxu2 }
 0x197   : > { %1681 = vst [vmem:[%s2401_s16 + $0xd8] sm:$0xff] %v1649_v3  ;;  %v1326_v26 = vadd.f32 %v2012_v59, %v1325_v41  ;;  %vm1342_vm7 = vweird.f32 %v2750_v49  ;;  %vm2804_vm8 = vcmp.eq.f32.partialorder %v1346_v1, 8.507059e+37  ;;  %v1349_v22 = vor.u32 1.1754944e-38, %v1348_v51  ;;  %v1011_v41 = vpop.f32.mrf.mxu3 }
 0x198   : > { %1660 = vst [vmem:[%s2401_s16 + $0x30] sm:$0xff] %v1628_v19  ;;  %v1255_v29 = vsel %vm1254_vm6, %v2010_v54, %v1251_v20  ;;  %v1339_v30 = vsub.f32 1.0, %v1338_v13  ;;  %vm1343_vm9 = vweird.f32 %v2014_v16  ;;  %2019 = vrcp.f32 %v2760_v58 }
 0x199   : > { %v2018_v7 = vpop.eup %2017  ;;  %v1260_v8 = vsel %vm2763_vm15, %v2748_v48, %v1255_v29  ;;  %v1330_v32 = vsel %vm2794_vm5, %v2012_v59, %v1326_v26  ;;  %vm1357_vm10 = vweird.f32 %v2758_v57  ;;  %v1361_v33 = vand.u32 2147483647, %v2758_v57  ;;  %vm2825_vm11 = vmor %vm1342_vm7, %vm1343_vm9 }
 0x19a   : > { %v1629_v28 = vmul.f32 %v2060_v36, %v1260_v8  ;;  %v1335_v37 = vsel %vm2786_vm4, %v1334_v23, %v1330_v32  ;;  %v1340_v38 = vmul.f32 %v2014_v16, %v1339_v30  ;;  %v1353_v40 = vmul.f32 %v2018_v7, %v2758_v57  ;;  %v2064_v32 = vld [vmem:[%s2167_s10 + $0x78] sm:$0xff] }
 0x19b   : > { %v1634_v43 = vmul.f32 %v2061_v42, %v1335_v37  ;;  %v1363_v47 = vand.u32 2147483648, %v2758_v57  ;;  %v1376_v48 = vand.u32 2147483647, %v2760_v58  ;;  %v1378_v31 = vand.u32 2147483648, %v2760_v58 }
 0x19c   : > { %1661 = vst [vmem:[%s2401_s16 + $0x38] sm:$0xff] %v1629_v28  ;;  %v1341_v53 = vadd.f32 %v2014_v16, %v1340_v38  ;;  %v1354_v52 = vsub.f32 1.0, %v1353_v40  ;;  %v2833_v54 = vadd.f32 1.0, %v2016_v17  ;;  %v951_v55 = vadd.f32 %v950_v24, %v2368_v62  ;;  %v2063_v17 = vld [vmem:[%s2167_s10 + $0x70] sm:$0xff] }
 0x19d   : > { %1666 = vst [vmem:[%s2401_s16 + $0x60] sm:$0xff] %v1634_v43  ;;  %vm2837_vm12 = vcmp.eq.f32.partialorder %v1361_v33, 8.507059e+37  ;;  %vm1372_vm13 = vweird.f32 %v2760_v58  ;;  %v980_v59 = vadd.f32 %v979_v27, %v2368_v62  ;;  %v1009_v60 = vadd.f32 %v1008_v35, %v2368_v62  ;;  %v924_v62 = vpop.f32.mrf.mxu0 }
 0x19e   : > { %v2020_v61 = vpop.eup %2019  ;;  %v1345_v14 = vsel %vm2825_vm11, %v2014_v16, %v1341_v53  ;;  %v1355_v63 = vmul.f32 %v2018_v7, %v1354_v52  ;;  %vm1358_vm14 = vweird.f32 %v2018_v7  ;;  %2021 = vrcp.f32 %v2833_v54 }
 0x19f   : > { %v1350_v10 = vsel %vm2804_vm8, %v1349_v22, %v1345_v14  ;;  %v1364_v44 = vor.u32 1.1754944e-38, %v1363_v47  ;;  %v1368_v34 = vmul.f32 %v2020_v61, %v2760_v58  ;;  %vm2850_vm15 = vcmp.eq.f32.partialorder %v1376_v48, 8.507059e+37  ;;  %vm1359_vm0 = vmor %vm1357_vm10, %vm1358_vm14  ;;  %v2069_v14 = vld [vmem:[%s2167_s10 + $0xe0] sm:$0xff] }
 0x1a0   : > { %v1635_v46 = vmul.f32 %v2062_v0, %v1350_v10  ;;  %v1356_v50 = vadd.f32 %v2018_v7, %v1355_v63  ;;  %v1379_v1 = vor.u32 1.1754944e-38, %v1378_v31  ;;  %v1880_v2 = vmul.f32 -1.442695, %v951_v55  ;;  %v2065_v55 = vld [vmem:[%s2167_s10 + $0xa0] sm:$0xff] }
 0x1a1   : > { %v1369_v51 = vsub.f32 1.0, %v1368_v34  ;;  %vm1447_vm1 = vweird.f32 %v2833_v54  ;;  %v1881_v15 = vmul.f32 -1.442695, %v980_v59  ;;  %v1882_v4 = vmul.f32 -1.442695, %v1009_v60 }
 0x1a2   : > { %1667 = vst [vmem:[%s2401_s16 + $0x68] sm:$0xff] %v1635_v46  ;;  %v1360_v16 = vsel %vm1359_vm0, %v2018_v7, %v1356_v50  ;;  %vm1373_vm2 = vweird.f32 %v2020_v61  ;;  %2023 = vpow2.f32 %v1880_v2  ;;  %v925_v12 = vadd.f32 %v924_v62, %v2517_v18 }
 0x1a3   : > { %v1365_v3 = vsel %vm2837_vm12, %v1364_v44, %v1360_v16  ;;  %v1370_v56 = vmul.f32 %v2020_v61, %v1369_v51  ;;  %2025 = vpow2.f32 %v1881_v15  ;;  %v954_v57 = vadd.f32 %v953_v6, %v2517_v18  ;;  %vm1374_vm3 = vmor %vm1372_vm13, %vm1373_vm2 }
 0x1a4   : > { %v2022_v39 = vpop.eup %2021  ;;  %v1636_v9 = vmul.f32 %v2063_v17, %v1365_v3  ;;  %2027 = vpow2.f32 %v1882_v4  ;;  %v1887_v19 = vmul.f32 -1.442695, %v925_v12  ;;  %v983_v20 = vadd.f32 %v982_v5, %v2517_v18 }
 0x1a5   : > { %v1371_v21 = vadd.f32 %v2020_v61, %v1370_v56  ;;  %v1443_v23 = vmul.f32 %v2022_v39, %v2833_v54  ;;  %v1451_v13 = vand.u32 2147483647, %v2833_v54  ;;  %v1888_v24 = vmul.f32 -1.442695, %v954_v57 }
 0x1a6   : > { %1668 = vst [vmem:[%s2401_s16 + $0x70] sm:$0xff] %v1636_v9  ;;  %v1453_v26 = vand.u32 2147483648, %v2833_v54  ;;  %2029 = vpow2.f32 %v1887_v19  ;;  %v1889_v25 = vmul.f32 -1.442695, %v983_v20  ;;  %v1012_v22 = vadd.f32 %v1011_v41, %v2517_v18 }
 0x1a7   : > { %v1375_v27 = vsel %vm1374_vm3, %v2020_v61, %v1371_v21  ;;  %v1444_v29 = vsub.f32 1.0, %v1443_v23  ;;  %vm1448_vm4 = vweird.f32 %v2022_v39  ;;  %2031 = vpow2.f32 %v1888_v24 }
 0x1a8   : > { %v2024_v30 = vpop.eup %2023  ;;  %v1380_v7 = vsel %vm2850_vm15, %v1379_v1, %v1375_v27  ;;  %2033 = vpow2.f32 %v1889_v25  ;;  %vm2878_vm5 = vmor %vm1447_vm1, %vm1448_vm4  ;;  %v1454_v28 = vor.u32 1.1754944e-38, %v1453_v26  ;;  %v1890_v38 = vmul.f32 -1.442695, %v1012_v22 }
 0x1a9   : > { %v2026_v8 = vpop.eup %2025  ;;  %v1637_v58 = vmul.f32 %v2064_v32, %v1380_v7  ;;  %v1445_v33 = vmul.f32 %v2022_v39, %v1444_v29  ;;  %v1131_v35 = vadd.f32 1.0, %v2024_v30  ;;  %vm1452_vm6 = vcmp.eq.f32.partialorder %v1451_v13, 8.507059e+37 }
 0x1aa   : > { %v2028_v36 = vpop.eup %2027  ;;  %v2882_v37 = vadd.f32 1.0, %v2026_v8 }
 0x1ab   : > { %1669 = vst [vmem:[%s2401_s16 + $0x78] sm:$0xff] %v1637_v58  ;;  %v1446_v40 = vadd.f32 %v2022_v39, %v1445_v33  ;;  %2035 = vrcp.f32 %v1131_v35  ;;  %v1466_v47 = vand.u32 2147483647, %v1131_v35  ;;  %v2888_v48 = vadd.f32 1.0, %v2028_v36  ;;  %v2066_v33 = vld [vmem:[%s2167_s10 + $0xa8] sm:$0xff] }
 0x1ac   : > { %v2030_v42 = vpop.eup %2029  ;;  %2037 = vrcp.f32 %v2882_v37  ;;  %v1468_v52 = vand.u32 2147483648, %v1131_v35  ;;  %v1481_v59 = vand.u32 2147483647, %v2882_v37  ;;  %vm1462_vm7 = vweird.f32 %v1131_v35 }
 0x1ad   : > { %v2032_v43 = vpop.eup %2031  ;;  %v1450_v45 = vsel %vm2878_vm5, %v2022_v39, %v1446_v40  ;;  %v2890_v54 = vadd.f32 1.0, %v2030_v42  ;;  %2039 = vpow2.f32 %v1890_v38  ;;  %v1483_v60 = vand.u32 2147483648, %v2882_v37 }
 0x1ae   : > { %v2034_v31 = vpop.eup %2033  ;;  %v1455_v53 = vsel %vm1452_vm6, %v1454_v28, %v1450_v45  ;;  %2041 = vrcp.f32 %v2888_v48  ;;  %vm2898_vm8 = vcmp.eq.f32.partialorder %v1466_v47, 8.507059e+37  ;;  %vm1477_vm9 = vweird.f32 %v2882_v37 }
 0x1af   : > { %v1642_v49 = vmul.f32 %v2065_v55, %v1455_v53  ;;  %2043 = vrcp.f32 %v2890_v54  ;;  %v2903_v63 = vadd.f32 1.0, %v2032_v43  ;;  %v2905_v10 = vadd.f32 1.0, %v2034_v31  ;;  %v2068_v55 = vld [vmem:[%s2167_s10 + $0xb8] sm:$0xff] }
 0x1b0   : > { %v1469_v11 = vor.u32 1.1754944e-38, %v1468_v52  ;;  %v1496_v62 = vand.u32 2147483647, %v2888_v48  ;;  %v1498_v0 = vand.u32 2147483648, %v2888_v48  ;;  %vm2910_vm10 = vcmp.eq.f32.partialorder %v1481_v59, 8.507059e+37 }
 0x1b1   : > { %v2036_v61 = vpop.eup %2035  ;;  %1674 = vst [vmem:[%s2401_s16 + $0xa0] sm:$0xff] %v1642_v49  ;;  %v1571_v1 = vand.u32 2147483647, %v2890_v54  ;;  %v1573_v2 = vand.u32 2147483648, %v2890_v54  ;;  %v1484_v15 = vor.u32 1.1754944e-38, %v1483_v60  ;;  %2045 = vrcp.f32 %v2903_v63 }
 0x1b2   : > { %v2038_v44 = vpop.eup %2037  ;;  %v1458_v34 = vmul.f32 %v2036_v61, %v1131_v35  ;;  %vm1463_vm11 = vweird.f32 %v2036_v61  ;;  %vm1492_vm12 = vweird.f32 %v2888_v48  ;;  %vm1567_vm13 = vweird.f32 %v2890_v54 }
 0x1b3   : > { %v1473_v46 = vmul.f32 %v2038_v44, %v2882_v37  ;;  %v2040_v6 = vpop.eup %2039  ;;  %2047 = vrcp.f32 %v2905_v10  ;;  %vm1478_vm14 = vweird.f32 %v2038_v44  ;;  %vm2921_vm15 = vcmp.eq.f32.partialorder %v1496_v62, 8.507059e+37  ;;  %vm2926_vm0 = vmor %vm1462_vm7, %vm1463_vm11  ;;  %v2067_v37 = vld [vmem:[%s2167_s10 + $0xb0] sm:$0xff] }
 0x1b4   : > { %v1459_v51 = vsub.f32 1.0, %v1458_v34  ;;  %v2042_v4 = vpop.eup %2041  ;;  %v1499_v57 = vor.u32 1.1754944e-38, %v1498_v0  ;;  %vm2931_vm1 = vcmp.eq.f32.partialorder %v1571_v1, 8.507059e+37  ;;  %v1574_v19 = vor.u32 1.1754944e-38, %v1573_v2  ;;  %vm1479_vm4 = vmor %vm1477_vm9, %vm1478_vm14  ;;  %v2070_v1 = vld [vmem:[%s2167_s10 + $0xe8] sm:$0xff] }
 0x1b5   : > { %v1474_v5 = vsub.f32 1.0, %v1473_v46  ;;  %v2044_v16 = vpop.eup %2043  ;;  %v1488_v3 = vmul.f32 %v2042_v4, %v2888_v48  ;;  %vm1582_vm2 = vweird.f32 %v2903_v63  ;;  %v1586_v23 = vand.u32 2147483647, %v2903_v63 }
 0x1b6   : > { %v1460_v12 = vmul.f32 %v2036_v61, %v1459_v51  ;;  %v1563_v17 = vmul.f32 %v2044_v16, %v2890_v54  ;;  %vm1568_vm3 = vweird.f32 %v2044_v16  ;;  %v1588_v26 = vand.u32 2147483648, %v2903_v63 }
 0x1b7   : > { %v1475_v39 = vmul.f32 %v2038_v44, %v1474_v5  ;;  %v1489_v21 = vsub.f32 1.0, %v1488_v3  ;;  %v2046_v25 = vpop.eup %2045  ;;  %vm1493_vm5 = vweird.f32 %v2042_v4  ;;  %v2943_v29 = vadd.f32 1.0, %v2040_v6  ;;  %vm2954_vm6 = vmor %vm1567_vm13, %vm1568_vm3 }
 0x1b8   : > { %v1461_v20 = vadd.f32 %v2036_v61, %v1460_v12  ;;  %v1564_v24 = vsub.f32 1.0, %v1563_v17  ;;  %v1578_v58 = vmul.f32 %v2046_v25, %v2903_v63  ;;  %vm1583_vm7 = vweird.f32 %v2046_v25  ;;  %v2072_v17 = vld [vmem:[%s2167_s10 + $0xf8] sm:$0xff] }
 0x1b9   : > { %v1476_v13 = vadd.f32 %v2038_v44, %v1475_v39  ;;  %v1490_v27 = vmul.f32 %v2042_v4, %v1489_v21  ;;  %v2048_v30 = vpop.eup %2047  ;;  %vm2964_vm9 = vcmp.eq.f32.partialorder %v1586_v23, 8.507059e+37  ;;  %v1589_v31 = vor.u32 1.1754944e-38, %v1588_v26 }
 0x1ba   : > { %v1465_v22 = vsel %vm2926_vm0, %v2036_v61, %v1461_v20  ;;  %v1565_v32 = vmul.f32 %v2044_v16, %v1564_v24  ;;  %v1579_v42 = vsub.f32 1.0, %v1578_v58  ;;  %v1593_v43 = vmul.f32 %v2048_v30, %v2905_v10 }
 0x1bb   : > { %v1470_v7 = vsel %vm2898_vm8, %v1469_v11, %v1465_v22  ;;  %v1480_v8 = vsel %vm1479_vm4, %v2038_v44, %v1476_v13  ;;  %v1491_v18 = vadd.f32 %v2042_v4, %v1490_v27  ;;  %vm1494_vm8 = vmor %vm1492_vm12, %vm1493_vm5  ;;  %2049 = vrcp.f32 %v2943_v29 }
 0x1bc   : > { %v1643_v35 = vmul.f32 %v2066_v33, %v1470_v7  ;;  %v1485_v36 = vsel %vm2910_vm10, %v1484_v15, %v1480_v8  ;;  %v1566_v40 = vadd.f32 %v2044_v16, %v1565_v32  ;;  %v1580_v52 = vmul.f32 %v2046_v25, %v1579_v42  ;;  %vm1584_vm10 = vmor %vm1582_vm2, %vm1583_vm7 }
 0x1bd   : > { %v1644_v38 = vmul.f32 %v2067_v37, %v1485_v36  ;;  %v1495_v45 = vsel %vm1494_vm8, %v2042_v4, %v1491_v18  ;;  %v1594_v54 = vsub.f32 1.0, %v1593_v43  ;;  %v1601_v60 = vand.u32 2147483647, %v2905_v10  ;;  %v2071_v4 = vld [vmem:[%s2167_s10 + $0xf0] sm:$0xff] }
 0x1be   : > { %1675 = vst [vmem:[%s2401_s16 + $0xa8] sm:$0xff] %v1643_v35  ;;  %v1500_v48 = vsel %vm2921_vm15, %v1499_v57, %v1495_v45  ;;  %v1570_v53 = vsel %vm2954_vm6, %v2044_v16, %v1566_v40  ;;  %v1603_v61 = vand.u32 2147483648, %v2905_v10  ;;  %v1581_v34 = vadd.f32 %v2046_v25, %v1580_v52 }
 0x1bf   : > { %1676 = vst [vmem:[%s2401_s16 + $0xb0] sm:$0xff] %v1644_v38  ;;  %v1645_v49 = vmul.f32 %v2068_v55, %v1500_v48  ;;  %v1575_v59 = vsel %vm2931_vm1, %v1574_v19, %v1570_v53  ;;  %v1595_v11 = vmul.f32 %v2048_v30, %v1594_v54  ;;  %vm1598_vm11 = vweird.f32 %v2048_v30 }
 0x1c0   : > { %v1650_v44 = vmul.f32 %v2069_v14, %v1575_v59  ;;  %v1585_v62 = vsel %vm1584_vm10, %v2046_v25, %v1581_v34  ;;  %vm1597_vm12 = vweird.f32 %v2905_v10  ;;  %v1604_v50 = vor.u32 1.1754944e-38, %v1603_v61 }
 0x1c1   : > { %1677 = vst [vmem:[%s2401_s16 + $0xb8] sm:$0xff] %v1645_v49  ;;  %v1596_v0 = vadd.f32 %v2048_v30, %v1595_v11  ;;  %v2050_v63 = vpop.eup %2049  ;;  %v1590_v46 = vsel %vm2964_vm9, %v1589_v31, %v1585_v62  ;;  %vm1599_vm13 = vmor %vm1597_vm12, %vm1598_vm11  ;;  %vm1602_vm14 = vcmp.eq.f32.partialorder %v1601_v60, 8.507059e+37  ;;  %v1618_v16 = vand.u32 2147483648, %v2943_v29 }
 0x1c2   : > { %1682 = vst [vmem:[%s2401_s16 + $0xe0] sm:$0xff] %v1650_v44  ;;  %v1651_v2 = vmul.f32 %v2070_v1, %v1590_v46  ;;  %v1608_v51 = vmul.f32 %v2050_v63, %v2943_v29  ;;  %vm1613_vm15 = vweird.f32 %v2050_v63  ;;  %v1616_v3 = vand.u32 2147483647, %v2943_v29 }
 0x1c3   : > { %v1600_v6 = vsel %vm1599_vm13, %v2048_v30, %v1596_v0  ;;  %vm1612_vm0 = vweird.f32 %v2943_v29  ;;  %v1619_v57 = vor.u32 1.1754944e-38, %v1618_v16 }
 0x1c4   : > { %v1605_v15 = vsel %vm1602_vm14, %v1604_v50, %v1600_v6  ;;  %1683 = vst [vmem:[%s2401_s16 + $0xe8] sm:$0xff] %v1651_v2  ;;  %v1609_v10 = vsub.f32 1.0, %v1608_v51  ;;  %vm1614_vm1 = vmor %vm1612_vm0, %vm1613_vm15  ;;  %vm1617_vm2 = vcmp.eq.f32.partialorder %v1616_v3, 8.507059e+37 }
 0x1c5   : > { %v1652_v5 = vmul.f32 %v2071_v4, %v1605_v15 }
 0x1c6   : > { %v1610_v12 = vmul.f32 %v2050_v63, %v1609_v10 }
 0x1c7   : > { %1684 = vst [vmem:[%s2401_s16 + $0xf0] sm:$0xff] %v1652_v5 }
 0x1c8   : > { %v1611_v56 = vadd.f32 %v2050_v63, %v1610_v12 }
 0x1ca   : > { %v1615_v41 = vsel %vm1614_vm1, %v2050_v63, %v1611_v56 }
 0x1cb   : > { %v1620_v39 = vsel %vm1617_vm2, %v1619_v57, %v1615_v41 }
 0x1cc   : > { %v1653_v9 = vmul.f32 %v2072_v17, %v1620_v39 }
 0x1ce   : > { %1685 = vst [vmem:[%s2401_s16 + $0xf8] sm:$0xff] %v1653_v9 }
 0x1cf PF: > { %s17_s26 = sadd.s32 1, %s2095_s26   ;;  %s3091_s24 = smov %s2091_s25 }
 0x1d0   : > { %p14_p5 = scmp.ge.s32.totalorder %s17_s26, 4   ;;  %s3092_s25 = smov %s3094_s27 }
 0x1d2   :  { %16 = sbr.rel (!%p14_p5) target bundleno = 2 (0x2), region = 84 }

</bundles_post_ra>
